<compile_context>
chip_gen: v7x
topology: tpu7x:2x2x1
jax: 0.10.0
libtpu: 0.0.40
codegen_flags: <defaults>
</compile_context>

<pallas_src>
import jax
import jax.numpy as jnp
from jax import lax
from jax.experimental import pallas as pl
from jax.experimental.pallas import tpu as pltpu

EPS = 1e-5  # PyTorch BatchNorm2d default eps


# ---------------------------------------------------------------------------
# Fused dense-block Pallas kernel (whole block, one image per grid step)
# ---------------------------------------------------------------------------
def _make_dense_block_kernel(depth, use_bottleneck, c_in, growth, h, w):
    hw = h * w
    pad_w = hw + 2 * w + 2  # flat activation + (1 row + 1 col) halo on each side

    def kernel(*refs):
        x_ref = refs[0]
        o_ref, pad_ref, im_ref = refs[-3:]
        p_refs = refs[1:-3]

        # Lane-position helpers (built once, reused by every tap / layer).
        col = lax.broadcasted_iota(jnp.int32, (1, hw), 1) % w
        keep_l = col >= 1           # source column x-1 stays inside the row
        keep_r = col < (w - 1)      # source column x+1 stays inside the row

        # Zero ONLY the halo strips of the padded flat activation buffer; the
        # body region is fully overwritten by every sub-layer.
        pad_rows = pad_ref.shape[0]
        zeros_halo = jnp.zeros((pad_rows, w + 1), jnp.bfloat16)
        pad_ref[:, 0:w + 1] = zeros_halo
        pad_ref[:, pad_w - (w + 1):pad_w] = zeros_halo

        # The output VMEM block doubles as the concatenation buffer:
        # rows [0:c_in) = input image; each sub-layer appends `growth` rows.
        o_ref[0, 0:c_in, :] = x_ref[0].astype(o_ref.dtype)

        c_l = c_in
        idx = 0
        for _ in range(depth):
            cur = o_ref[0, 0:c_l, :]                               # (c_l, HW) f32
            if use_bottleneck:
                s1, t1, w1, b1 = p_refs[idx:idx + 4]
                idx += 4
                a = jnp.maximum(cur * s1[...] + t1[...], 0.0)      # BN + ReLU (f32 VPU)
                cur = jnp.dot(w1[...].astype(jnp.bfloat16),        # 1x1 conv: one matmul
                              a.astype(jnp.bfloat16),
                              preferred_element_type=jnp.float32) + b1[...]
            s2, t2, w2, b2 = p_refs[idx:idx + 4]
            idx += 4
            c_mid = w2.shape[1] // 9

            a = jnp.maximum(cur * s2[...] + t2[...], 0.0)          # BN + ReLU (f32 VPU)
            pad_ref[0:c_mid, w + 1:w + 1 + hw] = a.astype(jnp.bfloat16)

            # im2col: each 3x3 tap is a static lane-shift of the padded flat
            # activation; only column wrap-around needs masking.
            for t in range(9):
                dy, dx = t // 3 - 1, t % 3 - 1
                start = (w + 1) + dy * w + dx
                sh = pad_ref[0:c_mid, start:start + hw]
                if dx == -1:
                    sh = jnp.where(keep_l, sh, jnp.zeros_like(sh))
                elif dx == 1:
                    sh = jnp.where(keep_r, sh, jnp.zeros_like(sh))
                im_ref[t * c_mid:(t + 1) * c_mid, :] = sh

            # 3x3 conv as ONE MXU matmul, K = 9*Cmid (bf16 operands, f32 acc).
            new = jnp.dot(w2[...].astype(jnp.bfloat16),
                          im_ref[0:9 * c_mid, :],
                          preferred_element_type=jnp.float32) + b2[...]

            # TODO(synk): F.dropout (only active when compression_factor > 0 and
            # training=True) is not implemented; eval / compression=0 makes it
            # an exact identity.
            o_ref[0, c_l:c_l + growth, :] = new.astype(o_ref.dtype)  # torch.cat, in place
            c_l += growth

    return kernel


def dense_layer_forward(x_nchw, params, use_bottleneck):
    """Forward of DenseLayer.  Input/output NCHW (PyTorch convention)."""
    n, c_in, h, w = x_nchw.shape
    hw = h * w
    depth = len(params)
    growth = params[0]["w2"].shape[-1]
    c_total = c_in + depth * growth
    c_mid_max = max(lp["w2"].shape[2] for lp in params)

    # Channels-major (C, H*W) per image == flattened NCHW: free reshape.
    x2 = x_nchw.reshape(n, c_in, hw)

    operands = [x2]
    in_specs = [pl.BlockSpec((1, c_in, hw), lambda i: (i, 0, 0))]

    def _resident(arr):
        # Small parameter tensors: whole-array blocks with constant index_map
        # so they stay VMEM-resident across all grid steps.
        operands.append(arr)
        in_specs.append(pl.BlockSpec(arr.shape, lambda i: (0, 0)))

    for lp in params:
        if use_bottleneck:
            c_l, inter = lp["w1"].shape
            _resident(lp["scale1"].reshape(c_l, 1))
            _resident(lp["shift1"].reshape(c_l, 1))
            _resident(jnp.transpose(lp["w1"]))                      # (inter, c_l)
            _resident(lp["b1"].reshape(inter, 1))
        c_mid = lp["w2"].shape[2]
        _resident(lp["scale2"].reshape(c_mid, 1))
        _resident(lp["shift2"].reshape(c_mid, 1))
        # (3,3,Cmid,growth) -> (growth, 9*Cmid); last axis ordered
        # (tap = kh*3+kw major, channel minor) to match the im2col scratch.
        _resident(jnp.transpose(lp["w2"], (3, 0, 1, 2)).reshape(growth, 9 * c_mid))
        _resident(lp["b2"].reshape(growth, 1))

    kernel = _make_dense_block_kernel(depth, use_bottleneck, c_in, growth, h, w)

    out = pl.pallas_call(
        kernel,
        out_shape=jax.ShapeDtypeStruct((n, c_total, hw), jnp.float32),
        grid=(n,),
        in_specs=in_specs,
        out_specs=pl.BlockSpec((1, c_total, hw), lambda i: (i, 0, 0)),
        scratch_shapes=[
            pltpu.VMEM((c_mid_max, hw + 2 * w + 2), jnp.bfloat16),  # padded flat act
            pltpu.VMEM((9 * c_mid_max, hw), jnp.bfloat16),          # im2col LHS
        ],
        compiler_params=pltpu.CompilerParams(
            dimension_semantics=("parallel",),
            vmem_limit_bytes=32 * 1024 * 1024),
    )(*operands)

    return out.reshape(n, c_total, h, w)  # free reshape back to NCHW


# ---------------------------------------------------------------------------
# Parameter init (deterministic, synthetic)
# ---------------------------------------------------------------------------
def _bn_affine(key, c):
    # eval-mode BatchNorm folded to per-channel (scale, shift).
    k1, k2, k3, k4 = jax.random.split(key, 4)
    gamma = 1.0 + 0.1 * jax.random.normal(k1, (c,), jnp.float32)
    beta = 0.1 * jax.random.normal(k2, (c,), jnp.float32)
    mean = 0.1 * jax.random.normal(k3, (c,), jnp.float32)
    var = jax.random.uniform(k4, (c,), jnp.float32, 0.5, 1.5)
    scale = gamma / jnp.sqrt(var + EPS)
    shift = beta - mean * scale
    return scale, shift


def init_dense_layer_params(key, in_features, depth, growth, bottleneck):
    params = []
    for l in range(depth):
        cin = in_features + l * growth
        lp = {}
        key, k_bn1, k_w1, k_b1, k_bn2, k_w2, k_b2 = jax.random.split(key, 7)
        cmid = cin
        if bottleneck is not None:
            inter = growth * bottleneck
            lp["scale1"], lp["shift1"] = _bn_affine(k_bn1, cin)
            lp["w1"] = 0.1 * jax.random.normal(k_w1, (cin, inter), jnp.float32)
            lp["b1"] = 0.1 * jax.random.normal(k_b1, (inter,), jnp.float32)
            cmid = inter
        lp["scale2"], lp["shift2"] = _bn_affine(k_bn2, cmid)
        lp["w2"] = 0.1 * jax.random.normal(k_w2, (3, 3, cmid, growth), jnp.float32)
        lp["b2"] = 0.1 * jax.random.normal(k_b2, (growth,), jnp.float32)
        params.append(lp)
    return params


# ---------------------------------------------------------------------------
# Pure-JAX reference (correctness check only)
# ---------------------------------------------------------------------------
def _ref_forward(x_nchw, params, use_bottleneck):
    x = x_nchw
    dn = ("NCHW", "OIHW", "NCHW")
    for lp in params:
        t = x
        if use_bottleneck:
            a = jnp.maximum(t * lp["scale1"][None, :, None, None]
                            + lp["shift1"][None, :, None, None], 0.0)
            w1 = lp["w1"].T[:, :, None, None]  # (Cout, Cin, 1, 1)
            t = lax.conv_general_dilated(a, w1, (1, 1), "VALID",
                                         dimension_numbers=dn)
            t = t + lp["b1"][None, :, None, None]
        a = jnp.maximum(t * lp["scale2"][None, :, None, None]
                        + lp["shift2"][None, :, None, None], 0.0)
        w2 = jnp.transpose(lp["w2"], (3, 2, 0, 1))  # (Cout, Cin, 3, 3)
        t = lax.conv_general_dilated(a, w2, (1, 1), ((1, 1), (1, 1)),
                                     dimension_numbers=dn)
        t = t + lp["b2"][None, :, None, None]
        x = jnp.concatenate([x, t], axis=1)
    return x


if __name__ == "__main__":
    # DenseLayer(in_features=4, depth=2, growth=8, bottleneck=2, compression=0)
    in_features, depth, growth, bottleneck, compression = 4, 2, 8, 2, 0
    n, h, w = 2, 16, 16

    key = jax.random.PRNGKey(0)
    k_x, k_p = jax.random.split(key)
    x = jax.random.normal(k_x, (n, in_features, h, w), jnp.float32)
    params = init_dense_layer_params(k_p, in_features, depth, growth, bottleneck)

    out = dense_layer_forward(x, params, bottleneck is not None)
    out = jax.block_until_ready(out)

    expected_c = in_features + depth * growth  # == DenseLayer.output()
    assert out.shape == (n, expected_c, h, w), out.shape

    ref = _ref_forward(x, params, bottleneck is not None)
    # bf16 MXU operands (f32 accumulation) -> slightly looser tolerance than f32.
    assert jnp.allclose(out, ref, atol=3e-2, rtol=3e-2), \
        float(jnp.max(jnp.abs(out - ref)))

    print("KERNEL_OK")
</pallas_src>

<mosaic_0001>
module attributes {stable_mosaic.version = 11 : i64} {
  func.func @kernel(%arg0: i32, %arg1: memref<1x4x256xf32, #tpu.memory_space<vmem>>, %arg2: memref<4x1xf32, #tpu.memory_space<vmem>>, %arg3: memref<4x1xf32, #tpu.memory_space<vmem>>, %arg4: memref<16x4xf32, #tpu.memory_space<vmem>>, %arg5: memref<16x1xf32, #tpu.memory_space<vmem>>, %arg6: memref<16x1xf32, #tpu.memory_space<vmem>>, %arg7: memref<16x1xf32, #tpu.memory_space<vmem>>, %arg8: memref<8x144xf32, #tpu.memory_space<vmem>>, %arg9: memref<8x1xf32, #tpu.memory_space<vmem>>, %arg10: memref<12x1xf32, #tpu.memory_space<vmem>>, %arg11: memref<12x1xf32, #tpu.memory_space<vmem>>, %arg12: memref<16x12xf32, #tpu.memory_space<vmem>>, %arg13: memref<16x1xf32, #tpu.memory_space<vmem>>, %arg14: memref<16x1xf32, #tpu.memory_space<vmem>>, %arg15: memref<16x1xf32, #tpu.memory_space<vmem>>, %arg16: memref<8x144xf32, #tpu.memory_space<vmem>>, %arg17: memref<8x1xf32, #tpu.memory_space<vmem>>, %arg18: memref<1x20x256xf32, #tpu.memory_space<vmem>>, %arg19: memref<16x290xbf16, #tpu.memory_space<vmem>>, %arg20: memref<144x256xbf16, #tpu.memory_space<vmem>>) attributes {dimension_semantics = [#tpu.dimension_semantics<parallel>], iteration_bounds = array<i64: 2>, scalar_prefetch = 0 : i64, scratch_operands = 2 : i64, tpu.core_type = #tpu.core_type<tc>, window_params = [{transform_indices = @transform_0, window_bounds = array<i64: 1, 4, 256>}, {pipeline_mode = #tpu.pipeline_mode<synchronous>, transform_indices = @transform_1, window_bounds = array<i64: 4, 1>}, {pipeline_mode = #tpu.pipeline_mode<synchronous>, transform_indices = @transform_2, window_bounds = array<i64: 4, 1>}, {pipeline_mode = #tpu.pipeline_mode<synchronous>, transform_indices = @transform_3, window_bounds = array<i64: 16, 4>}, {pipeline_mode = #tpu.pipeline_mode<synchronous>, transform_indices = @transform_4, window_bounds = array<i64: 16, 1>}, {pipeline_mode = #tpu.pipeline_mode<synchronous>, transform_indices = @transform_5, window_bounds = array<i64: 16, 1>}, {pipeline_mode = #tpu.pipeline_mode<synchronous>, transform_indices = @transform_6, window_bounds = array<i64: 16, 1>}, {pipeline_mode = #tpu.pipeline_mode<synchronous>, transform_indices = @transform_7, window_bounds = array<i64: 8, 144>}, {pipeline_mode = #tpu.pipeline_mode<synchronous>, transform_indices = @transform_8, window_bounds = array<i64: 8, 1>}, {pipeline_mode = #tpu.pipeline_mode<synchronous>, transform_indices = @transform_9, window_bounds = array<i64: 12, 1>}, {pipeline_mode = #tpu.pipeline_mode<synchronous>, transform_indices = @transform_10, window_bounds = array<i64: 12, 1>}, {pipeline_mode = #tpu.pipeline_mode<synchronous>, transform_indices = @transform_11, window_bounds = array<i64: 16, 12>}, {pipeline_mode = #tpu.pipeline_mode<synchronous>, transform_indices = @transform_12, window_bounds = array<i64: 16, 1>}, {pipeline_mode = #tpu.pipeline_mode<synchronous>, transform_indices = @transform_13, window_bounds = array<i64: 16, 1>}, {pipeline_mode = #tpu.pipeline_mode<synchronous>, transform_indices = @transform_14, window_bounds = array<i64: 16, 1>}, {pipeline_mode = #tpu.pipeline_mode<synchronous>, transform_indices = @transform_15, window_bounds = array<i64: 8, 144>}, {pipeline_mode = #tpu.pipeline_mode<synchronous>, transform_indices = @transform_16, window_bounds = array<i64: 8, 1>}, {transform_indices = @transform_17, window_bounds = array<i64: 1, 20, 256>}]} {
    %0 = tpu.iota {dimensions = array<i32: 1>} : vector<1x256xi32>
    %c16_i32 = arith.constant 16 : i32
    %c0_i32 = arith.constant 0 : i32
    %1 = arith.cmpi eq, %c16_i32, %c0_i32 : i32
    %c1_i32 = arith.constant 1 : i32
    %2 = arith.select %1, %c1_i32, %c16_i32 : i32
    %3 = vector.broadcast %2 : i32 to vector<1x256xi32>
    %4 = arith.remsi %0, %3 : vector<1x256xi32>
    %c0_i32_0 = arith.constant 0 : i32
    %5 = vector.broadcast %c0_i32_0 : i32 to vector<1x256xi32>
    %6 = arith.cmpi ne, %4, %5 : vector<1x256xi32>
    %c0_i32_1 = arith.constant 0 : i32
    %7 = vector.broadcast %c0_i32_1 : i32 to vector<1x256xi32>
    %8 = arith.cmpi slt, %4, %7 : vector<1x256xi32>
    %c0_i32_2 = arith.constant 0 : i32
    %9 = arith.cmpi slt, %2, %c0_i32_2 : i32
    %10 = vector.broadcast %9 : i1 to vector<1x256xi1>
    %11 = vector.broadcast %10 : vector<1x256xi1> to vector<1x256xi1>
    %12 = arith.xori %8, %11 : vector<1x256xi1>
    %13 = arith.andi %12, %6 : vector<1x256xi1>
    %14 = vector.broadcast %2 : i32 to vector<1x256xi32>
    %15 = arith.addi %4, %14 : vector<1x256xi32>
    %16 = arith.select %13, %15, %4 : vector<1x256xi1>, vector<1x256xi32>
    %c1_i32_3 = arith.constant 1 : i32
    %17 = vector.broadcast %c1_i32_3 : i32 to vector<1x256xi32>
    %18 = arith.cmpi sge, %16, %17 : vector<1x256xi32>
    %c15_i32 = arith.constant 15 : i32
    %19 = vector.broadcast %c15_i32 : i32 to vector<1x256xi32>
    %20 = arith.cmpi slt, %16, %19 : vector<1x256xi32>
    %cst = arith.constant 0.000000e+00 : bf16
    %21 = vector.broadcast %cst : bf16 to vector<16x17xbf16>
    %c0 = arith.constant 0 : index
    %c0_4 = arith.constant 0 : index
    %22 = vector.load %arg19[%c0, %c0_4] : memref<16x290xbf16, #tpu.memory_space<vmem>>, vector<16x17xbf16>
    tpu.vector_store %arg19[%c0, %c0_4], %21 {strides = array<i32>} : memref<16x290xbf16, #tpu.memory_space<vmem>>, vector<16x17xbf16>,
    %c0_5 = arith.constant 0 : index
    %c273 = arith.constant 273 : index
    %23 = vector.load %arg19[%c0_5, %c273] : memref<16x290xbf16, #tpu.memory_space<vmem>>, vector<16x17xbf16>
    tpu.vector_store %arg19[%c0_5, %c273], %21 {strides = array<i32>} : memref<16x290xbf16, #tpu.memory_space<vmem>>, vector<16x17xbf16>,
    %c0_6 = arith.constant 0 : index
    %c0_7 = arith.constant 0 : index
    %c0_8 = arith.constant 0 : index
    %24 = vector.load %arg1[%c0_6, %c0_7, %c0_8] : memref<1x4x256xf32, #tpu.memory_space<vmem>>, vector<1x4x256xf32>
    %25 = vector.shape_cast %24 : vector<1x4x256xf32> to vector<4x256xf32>
    %c0_9 = arith.constant 0 : index
    %c0_10 = arith.constant 0 : index
    %c0_11 = arith.constant 0 : index
    %26 = vector.load %arg18[%c0_9, %c0_10, %c0_11] : memref<1x20x256xf32, #tpu.memory_space<vmem>>, vector<1x4x256xf32>
    %27 = vector.shape_cast %26 : vector<1x4x256xf32> to vector<4x256xf32>
    %28 = vector.shape_cast %25 : vector<4x256xf32> to vector<1x4x256xf32>
    tpu.vector_store %arg18[%c0_9, %c0_10, %c0_11], %28 {strides = array<i32>} : memref<1x20x256xf32, #tpu.memory_space<vmem>>, vector<1x4x256xf32>,
    %c0_12 = arith.constant 0 : index
    %c0_13 = arith.constant 0 : index
    %c0_14 = arith.constant 0 : index
    %29 = vector.load %arg18[%c0_12, %c0_13, %c0_14] : memref<1x20x256xf32, #tpu.memory_space<vmem>>, vector<1x4x256xf32>
    %30 = vector.shape_cast %29 : vector<1x4x256xf32> to vector<4x256xf32>
    %c0_15 = arith.constant 0 : index
    %c0_16 = arith.constant 0 : index
    %31 = vector.load %arg2[%c0_15, %c0_16] : memref<4x1xf32, #tpu.memory_space<vmem>>, vector<4x1xf32>
    %32 = vector.broadcast %31 : vector<4x1xf32> to vector<4x256xf32>
    %33 = arith.mulf %30, %32 : vector<4x256xf32>
    %c0_17 = arith.constant 0 : index
    %c0_18 = arith.constant 0 : index
    %34 = vector.load %arg3[%c0_17, %c0_18] : memref<4x1xf32, #tpu.memory_space<vmem>>, vector<4x1xf32>
    %35 = vector.broadcast %34 : vector<4x1xf32> to vector<4x256xf32>
    %36 = arith.addf %33, %35 : vector<4x256xf32>
    %cst_19 = arith.constant 0.000000e+00 : f32
    %37 = vector.broadcast %cst_19 : f32 to vector<4x256xf32>
    %38 = arith.maximumf %36, %37 : vector<4x256xf32>
    %c0_20 = arith.constant 0 : index
    %c0_21 = arith.constant 0 : index
    %39 = vector.load %arg4[%c0_20, %c0_21] : memref<16x4xf32, #tpu.memory_space<vmem>>, vector<16x4xf32>
    %40 = arith.truncf %39 : vector<16x4xf32> to vector<16x4xbf16>
    %41 = arith.truncf %38 : vector<4x256xf32> to vector<4x256xbf16>
    %cst_22 = arith.constant dense<0.000000e+00> : vector<16x256xf32>
    %42 = tpu.matmul %40, %41, %cst_22 {dimension_numbers = #tpu.dot_dimension_numbers<[1], [0], [0], [1], [0, 0, 1, 1], [], []>} : vector<16x4xbf16>, vector<4x256xbf16>, vector<16x256xf32> -> vector<16x256xf32>
    %c0_23 = arith.constant 0 : index
    %c0_24 = arith.constant 0 : index
    %43 = vector.load %arg5[%c0_23, %c0_24] : memref<16x1xf32, #tpu.memory_space<vmem>>, vector<16x1xf32>
    %44 = vector.broadcast %43 : vector<16x1xf32> to vector<16x256xf32>
    %45 = arith.addf %42, %44 : vector<16x256xf32>
    %c0_25 = arith.constant 0 : index
    %c0_26 = arith.constant 0 : index
    %46 = vector.load %arg6[%c0_25, %c0_26] : memref<16x1xf32, #tpu.memory_space<vmem>>, vector<16x1xf32>
    %47 = vector.broadcast %46 : vector<16x1xf32> to vector<16x256xf32>
    %48 = arith.mulf %45, %47 : vector<16x256xf32>
    %c0_27 = arith.constant 0 : index
    %c0_28 = arith.constant 0 : index
    %49 = vector.load %arg7[%c0_27, %c0_28] : memref<16x1xf32, #tpu.memory_space<vmem>>, vector<16x1xf32>
    %50 = vector.broadcast %49 : vector<16x1xf32> to vector<16x256xf32>
    %51 = arith.addf %48, %50 : vector<16x256xf32>
    %cst_29 = arith.constant 0.000000e+00 : f32
    %52 = vector.broadcast %cst_29 : f32 to vector<16x256xf32>
    %53 = arith.maximumf %51, %52 : vector<16x256xf32>
    %54 = arith.truncf %53 : vector<16x256xf32> to vector<16x256xbf16>
    %c0_30 = arith.constant 0 : index
    %c17 = arith.constant 17 : index
    %55 = vector.load %arg19[%c0_30, %c17] : memref<16x290xbf16, #tpu.memory_space<vmem>>, vector<16x256xbf16>
    tpu.vector_store %arg19[%c0_30, %c17], %54 {strides = array<i32>} : memref<16x290xbf16, #tpu.memory_space<vmem>>, vector<16x256xbf16>,
    %c0_31 = arith.constant 0 : index
    %c0_32 = arith.constant 0 : index
    %56 = vector.load %arg19[%c0_31, %c0_32] : memref<16x290xbf16, #tpu.memory_space<vmem>>, vector<16x256xbf16>
    %cst_33 = arith.constant 0.000000e+00 : bf16
    %57 = vector.broadcast %cst_33 : bf16 to vector<16x256xbf16>
    %58 = vector.shape_cast %18 : vector<1x256xi1> to vector<1x256xi1>
    %59 = vector.broadcast %58 : vector<1x256xi1> to vector<16x256xi1>
    %60 = arith.select %59, %56, %57 : vector<16x256xi1>, vector<16x256xbf16>
    %c0_34 = arith.constant 0 : index
    %c0_35 = arith.constant 0 : index
    %61 = vector.load %arg20[%c0_34, %c0_35] : memref<144x256xbf16, #tpu.memory_space<vmem>>, vector<16x256xbf16>
    tpu.vector_store %arg20[%c0_34, %c0_35], %60 {strides = array<i32>} : memref<144x256xbf16, #tpu.memory_space<vmem>>, vector<16x256xbf16>,
    %c0_36 = arith.constant 0 : index
    %c1 = arith.constant 1 : index
    %62 = vector.load %arg19[%c0_36, %c1] : memref<16x290xbf16, #tpu.memory_space<vmem>>, vector<16x256xbf16>
    %c16 = arith.constant 16 : index
    %c0_37 = arith.constant 0 : index
    %63 = vector.load %arg20[%c16, %c0_37] : memref<144x256xbf16, #tpu.memory_space<vmem>>, vector<16x256xbf16>
    tpu.vector_store %arg20[%c16, %c0_37], %62 {strides = array<i32>} : memref<144x256xbf16, #tpu.memory_space<vmem>>, vector<16x256xbf16>,
    %c0_38 = arith.constant 0 : index
    %c2 = arith.constant 2 : index
    %64 = vector.load %arg19[%c0_38, %c2] : memref<16x290xbf16, #tpu.memory_space<vmem>>, vector<16x256xbf16>
    %cst_39 = arith.constant 0.000000e+00 : bf16
    %65 = vector.broadcast %cst_39 : bf16 to vector<16x256xbf16>
    %66 = vector.shape_cast %20 : vector<1x256xi1> to vector<1x256xi1>
    %67 = vector.broadcast %66 : vector<1x256xi1> to vector<16x256xi1>
    %68 = arith.select %67, %64, %65 : vector<16x256xi1>, vector<16x256xbf16>
    %c32 = arith.constant 32 : index
    %c0_40 = arith.constant 0 : index
    %69 = vector.load %arg20[%c32, %c0_40] : memref<144x256xbf16, #tpu.memory_space<vmem>>, vector<16x256xbf16>
    tpu.vector_store %arg20[%c32, %c0_40], %68 {strides = array<i32>} : memref<144x256xbf16, #tpu.memory_space<vmem>>, vector<16x256xbf16>,
    %c0_41 = arith.constant 0 : index
    %c16_42 = arith.constant 16 : index
    %70 = vector.load %arg19[%c0_41, %c16_42] : memref<16x290xbf16, #tpu.memory_space<vmem>>, vector<16x256xbf16>
    %cst_43 = arith.constant 0.000000e+00 : bf16
    %71 = vector.broadcast %cst_43 : bf16 to vector<16x256xbf16>
    %72 = vector.shape_cast %18 : vector<1x256xi1> to vector<1x256xi1>
    %73 = vector.broadcast %72 : vector<1x256xi1> to vector<16x256xi1>
    %74 = arith.select %73, %70, %71 : vector<16x256xi1>, vector<16x256xbf16>
    %c48 = arith.constant 48 : index
    %c0_44 = arith.constant 0 : index
    %75 = vector.load %arg20[%c48, %c0_44] : memref<144x256xbf16, #tpu.memory_space<vmem>>, vector<16x256xbf16>
    tpu.vector_store %arg20[%c48, %c0_44], %74 {strides = array<i32>} : memref<144x256xbf16, #tpu.memory_space<vmem>>, vector<16x256xbf16>,
    %c0_45 = arith.constant 0 : index
    %c17_46 = arith.constant 17 : index
    %76 = vector.load %arg19[%c0_45, %c17_46] : memref<16x290xbf16, #tpu.memory_space<vmem>>, vector<16x256xbf16>
    %c64 = arith.constant 64 : index
    %c0_47 = arith.constant 0 : index
    %77 = vector.load %arg20[%c64, %c0_47] : memref<144x256xbf16, #tpu.memory_space<vmem>>, vector<16x256xbf16>
    tpu.vector_store %arg20[%c64, %c0_47], %76 {strides = array<i32>} : memref<144x256xbf16, #tpu.memory_space<vmem>>, vector<16x256xbf16>,
    %c0_48 = arith.constant 0 : index
    %c18 = arith.constant 18 : index
    %78 = vector.load %arg19[%c0_48, %c18] : memref<16x290xbf16, #tpu.memory_space<vmem>>, vector<16x256xbf16>
    %cst_49 = arith.constant 0.000000e+00 : bf16
    %79 = vector.broadcast %cst_49 : bf16 to vector<16x256xbf16>
    %80 = vector.shape_cast %20 : vector<1x256xi1> to vector<1x256xi1>
    %81 = vector.broadcast %80 : vector<1x256xi1> to vector<16x256xi1>
    %82 = arith.select %81, %78, %79 : vector<16x256xi1>, vector<16x256xbf16>
    %c80 = arith.constant 80 : index
    %c0_50 = arith.constant 0 : index
    %83 = vector.load %arg20[%c80, %c0_50] : memref<144x256xbf16, #tpu.memory_space<vmem>>, vector<16x256xbf16>
    tpu.vector_store %arg20[%c80, %c0_50], %82 {strides = array<i32>} : memref<144x256xbf16, #tpu.memory_space<vmem>>, vector<16x256xbf16>,
    %c0_51 = arith.constant 0 : index
    %c32_52 = arith.constant 32 : index
    %84 = vector.load %arg19[%c0_51, %c32_52] : memref<16x290xbf16, #tpu.memory_space<vmem>>, vector<16x256xbf16>
    %cst_53 = arith.constant 0.000000e+00 : bf16
    %85 = vector.broadcast %cst_53 : bf16 to vector<16x256xbf16>
    %86 = vector.shape_cast %18 : vector<1x256xi1> to vector<1x256xi1>
    %87 = vector.broadcast %86 : vector<1x256xi1> to vector<16x256xi1>
    %88 = arith.select %87, %84, %85 : vector<16x256xi1>, vector<16x256xbf16>
    %c96 = arith.constant 96 : index
    %c0_54 = arith.constant 0 : index
    %89 = vector.load %arg20[%c96, %c0_54] : memref<144x256xbf16, #tpu.memory_space<vmem>>, vector<16x256xbf16>
    tpu.vector_store %arg20[%c96, %c0_54], %88 {strides = array<i32>} : memref<144x256xbf16, #tpu.memory_space<vmem>>, vector<16x256xbf16>,
    %c0_55 = arith.constant 0 : index
    %c33 = arith.constant 33 : index
    %90 = vector.load %arg19[%c0_55, %c33] : memref<16x290xbf16, #tpu.memory_space<vmem>>, vector<16x256xbf16>
    %c112 = arith.constant 112 : index
    %c0_56 = arith.constant 0 : index
    %91 = vector.load %arg20[%c112, %c0_56] : memref<144x256xbf16, #tpu.memory_space<vmem>>, vector<16x256xbf16>
    tpu.vector_store %arg20[%c112, %c0_56], %90 {strides = array<i32>} : memref<144x256xbf16, #tpu.memory_space<vmem>>, vector<16x256xbf16>,
    %c0_57 = arith.constant 0 : index
    %c34 = arith.constant 34 : index
    %92 = vector.load %arg19[%c0_57, %c34] : memref<16x290xbf16, #tpu.memory_space<vmem>>, vector<16x256xbf16>
    %cst_58 = arith.constant 0.000000e+00 : bf16
    %93 = vector.broadcast %cst_58 : bf16 to vector<16x256xbf16>
    %94 = vector.shape_cast %20 : vector<1x256xi1> to vector<1x256xi1>
    %95 = vector.broadcast %94 : vector<1x256xi1> to vector<16x256xi1>
    %96 = arith.select %95, %92, %93 : vector<16x256xi1>, vector<16x256xbf16>
    %c128 = arith.constant 128 : index
    %c0_59 = arith.constant 0 : index
    %97 = vector.load %arg20[%c128, %c0_59] : memref<144x256xbf16, #tpu.memory_space<vmem>>, vector<16x256xbf16>
    tpu.vector_store %arg20[%c128, %c0_59], %96 {strides = array<i32>} : memref<144x256xbf16, #tpu.memory_space<vmem>>, vector<16x256xbf16>,
    %c0_60 = arith.constant 0 : index
    %c0_61 = arith.constant 0 : index
    %98 = vector.load %arg8[%c0_60, %c0_61] : memref<8x144xf32, #tpu.memory_space<vmem>>, vector<8x144xf32>
    %99 = arith.truncf %98 : vector<8x144xf32> to vector<8x144xbf16>
    %c0_62 = arith.constant 0 : index
    %c0_63 = arith.constant 0 : index
    %100 = vector.load %arg20[%c0_62, %c0_63] : memref<144x256xbf16, #tpu.memory_space<vmem>>, vector<144x256xbf16>
    %cst_64 = arith.constant dense<0.000000e+00> : vector<8x256xf32>
    %101 = tpu.matmul %99, %100, %cst_64 {dimension_numbers = #tpu.dot_dimension_numbers<[1], [0], [0], [1], [0, 0, 1, 1], [], []>} : vector<8x144xbf16>, vector<144x256xbf16>, vector<8x256xf32> -> vector<8x256xf32>
    %c0_65 = arith.constant 0 : index
    %c0_66 = arith.constant 0 : index
    %102 = vector.load %arg9[%c0_65, %c0_66] : memref<8x1xf32, #tpu.memory_space<vmem>>, vector<8x1xf32>
    %103 = vector.broadcast %102 : vector<8x1xf32> to vector<8x256xf32>
    %104 = arith.addf %101, %103 : vector<8x256xf32>
    %c0_67 = arith.constant 0 : index
    %c4 = arith.constant 4 : index
    %c0_68 = arith.constant 0 : index
    %105 = vector.load %arg18[%c0_67, %c4, %c0_68] : memref<1x20x256xf32, #tpu.memory_space<vmem>>, vector<1x8x256xf32>
    %106 = vector.shape_cast %105 : vector<1x8x256xf32> to vector<8x256xf32>
    %107 = vector.shape_cast %104 : vector<8x256xf32> to vector<1x8x256xf32>
    tpu.vector_store %arg18[%c0_67, %c4, %c0_68], %107 {strides = array<i32>} : memref<1x20x256xf32, #tpu.memory_space<vmem>>, vector<1x8x256xf32>,
    %c0_69 = arith.constant 0 : index
    %c0_70 = arith.constant 0 : index
    %c0_71 = arith.constant 0 : index
    %108 = vector.load %arg18[%c0_69, %c0_70, %c0_71] : memref<1x20x256xf32, #tpu.memory_space<vmem>>, vector<1x12x256xf32>
    %109 = vector.shape_cast %108 : vector<1x12x256xf32> to vector<12x256xf32>
    %c0_72 = arith.constant 0 : index
    %c0_73 = arith.constant 0 : index
    %110 = vector.load %arg10[%c0_72, %c0_73] : memref<12x1xf32, #tpu.memory_space<vmem>>, vector<12x1xf32>
    %111 = vector.broadcast %110 : vector<12x1xf32> to vector<12x256xf32>
    %112 = arith.mulf %109, %111 : vector<12x256xf32>
    %c0_74 = arith.constant 0 : index
    %c0_75 = arith.constant 0 : index
    %113 = vector.load %arg11[%c0_74, %c0_75] : memref<12x1xf32, #tpu.memory_space<vmem>>, vector<12x1xf32>
    %114 = vector.broadcast %113 : vector<12x1xf32> to vector<12x256xf32>
    %115 = arith.addf %112, %114 : vector<12x256xf32>
    %cst_76 = arith.constant 0.000000e+00 : f32
    %116 = vector.broadcast %cst_76 : f32 to vector<12x256xf32>
    %117 = arith.maximumf %115, %116 : vector<12x256xf32>
    %c0_77 = arith.constant 0 : index
    %c0_78 = arith.constant 0 : index
    %118 = vector.load %arg12[%c0_77, %c0_78] : memref<16x12xf32, #tpu.memory_space<vmem>>, vector<16x12xf32>
    %119 = arith.truncf %118 : vector<16x12xf32> to vector<16x12xbf16>
    %120 = arith.truncf %117 : vector<12x256xf32> to vector<12x256xbf16>
    %cst_79 = arith.constant dense<0.000000e+00> : vector<16x256xf32>
    %121 = tpu.matmul %119, %120, %cst_79 {dimension_numbers = #tpu.dot_dimension_numbers<[1], [0], [0], [1], [0, 0, 1, 1], [], []>} : vector<16x12xbf16>, vector<12x256xbf16>, vector<16x256xf32> -> vector<16x256xf32>
    %c0_80 = arith.constant 0 : index
    %c0_81 = arith.constant 0 : index
    %122 = vector.load %arg13[%c0_80, %c0_81] : memref<16x1xf32, #tpu.memory_space<vmem>>, vector<16x1xf32>
    %123 = vector.broadcast %122 : vector<16x1xf32> to vector<16x256xf32>
    %124 = arith.addf %121, %123 : vector<16x256xf32>
    %c0_82 = arith.constant 0 : index
    %c0_83 = arith.constant 0 : index
    %125 = vector.load %arg14[%c0_82, %c0_83] : memref<16x1xf32, #tpu.memory_space<vmem>>, vector<16x1xf32>
    %126 = vector.broadcast %125 : vector<16x1xf32> to vector<16x256xf32>
    %127 = arith.mulf %124, %126 : vector<16x256xf32>
    %c0_84 = arith.constant 0 : index
    %c0_85 = arith.constant 0 : index
    %128 = vector.load %arg15[%c0_84, %c0_85] : memref<16x1xf32, #tpu.memory_space<vmem>>, vector<16x1xf32>
    %129 = vector.broadcast %128 : vector<16x1xf32> to vector<16x256xf32>
    %130 = arith.addf %127, %129 : vector<16x256xf32>
    %cst_86 = arith.constant 0.000000e+00 : f32
    %131 = vector.broadcast %cst_86 : f32 to vector<16x256xf32>
    %132 = arith.maximumf %130, %131 : vector<16x256xf32>
    %133 = arith.truncf %132 : vector<16x256xf32> to vector<16x256xbf16>
    %c0_87 = arith.constant 0 : index
    %c17_88 = arith.constant 17 : index
    %134 = vector.load %arg19[%c0_87, %c17_88] : memref<16x290xbf16, #tpu.memory_space<vmem>>, vector<16x256xbf16>
    tpu.vector_store %arg19[%c0_87, %c17_88], %133 {strides = array<i32>} : memref<16x290xbf16, #tpu.memory_space<vmem>>, vector<16x256xbf16>,
    %c0_89 = arith.constant 0 : index
    %c0_90 = arith.constant 0 : index
    %135 = vector.load %arg19[%c0_89, %c0_90] : memref<16x290xbf16, #tpu.memory_space<vmem>>, vector<16x256xbf16>
    %cst_91 = arith.constant 0.000000e+00 : bf16
    %136 = vector.broadcast %cst_91 : bf16 to vector<16x256xbf16>
    %137 = vector.shape_cast %18 : vector<1x256xi1> to vector<1x256xi1>
    %138 = vector.broadcast %137 : vector<1x256xi1> to vector<16x256xi1>
    %139 = arith.select %138, %135, %136 : vector<16x256xi1>, vector<16x256xbf16>
    %c0_92 = arith.constant 0 : index
    %c0_93 = arith.constant 0 : index
    %140 = vector.load %arg20[%c0_92, %c0_93] : memref<144x256xbf16, #tpu.memory_space<vmem>>, vector<16x256xbf16>
    tpu.vector_store %arg20[%c0_92, %c0_93], %139 {strides = array<i32>} : memref<144x256xbf16, #tpu.memory_space<vmem>>, vector<16x256xbf16>,
    %c0_94 = arith.constant 0 : index
    %c1_95 = arith.constant 1 : index
    %141 = vector.load %arg19[%c0_94, %c1_95] : memref<16x290xbf16, #tpu.memory_space<vmem>>, vector<16x256xbf16>
    %c16_96 = arith.constant 16 : index
    %c0_97 = arith.constant 0 : index
    %142 = vector.load %arg20[%c16_96, %c0_97] : memref<144x256xbf16, #tpu.memory_space<vmem>>, vector<16x256xbf16>
    tpu.vector_store %arg20[%c16_96, %c0_97], %141 {strides = array<i32>} : memref<144x256xbf16, #tpu.memory_space<vmem>>, vector<16x256xbf16>,
    %c0_98 = arith.constant 0 : index
    %c2_99 = arith.constant 2 : index
    %143 = vector.load %arg19[%c0_98, %c2_99] : memref<16x290xbf16, #tpu.memory_space<vmem>>, vector<16x256xbf16>
    %cst_100 = arith.constant 0.000000e+00 : bf16
    %144 = vector.broadcast %cst_100 : bf16 to vector<16x256xbf16>
    %145 = vector.shape_cast %20 : vector<1x256xi1> to vector<1x256xi1>
    %146 = vector.broadcast %145 : vector<1x256xi1> to vector<16x256xi1>
    %147 = arith.select %146, %143, %144 : vector<16x256xi1>, vector<16x256xbf16>
    %c32_101 = arith.constant 32 : index
    %c0_102 = arith.constant 0 : index
    %148 = vector.load %arg20[%c32_101, %c0_102] : memref<144x256xbf16, #tpu.memory_space<vmem>>, vector<16x256xbf16>
    tpu.vector_store %arg20[%c32_101, %c0_102], %147 {strides = array<i32>} : memref<144x256xbf16, #tpu.memory_space<vmem>>, vector<16x256xbf16>,
    %c0_103 = arith.constant 0 : index
    %c16_104 = arith.constant 16 : index
    %149 = vector.load %arg19[%c0_103, %c16_104] : memref<16x290xbf16, #tpu.memory_space<vmem>>, vector<16x256xbf16>
    %cst_105 = arith.constant 0.000000e+00 : bf16
    %150 = vector.broadcast %cst_105 : bf16 to vector<16x256xbf16>
    %151 = vector.shape_cast %18 : vector<1x256xi1> to vector<1x256xi1>
    %152 = vector.broadcast %151 : vector<1x256xi1> to vector<16x256xi1>
    %153 = arith.select %152, %149, %150 : vector<16x256xi1>, vector<16x256xbf16>
    %c48_106 = arith.constant 48 : index
    %c0_107 = arith.constant 0 : index
    %154 = vector.load %arg20[%c48_106, %c0_107] : memref<144x256xbf16, #tpu.memory_space<vmem>>, vector<16x256xbf16>
    tpu.vector_store %arg20[%c48_106, %c0_107], %153 {strides = array<i32>} : memref<144x256xbf16, #tpu.memory_space<vmem>>, vector<16x256xbf16>,
    %c0_108 = arith.constant 0 : index
    %c17_109 = arith.constant 17 : index
    %155 = vector.load %arg19[%c0_108, %c17_109] : memref<16x290xbf16, #tpu.memory_space<vmem>>, vector<16x256xbf16>
    %c64_110 = arith.constant 64 : index
    %c0_111 = arith.constant 0 : index
    %156 = vector.load %arg20[%c64_110, %c0_111] : memref<144x256xbf16, #tpu.memory_space<vmem>>, vector<16x256xbf16>
    tpu.vector_store %arg20[%c64_110, %c0_111], %155 {strides = array<i32>} : memref<144x256xbf16, #tpu.memory_space<vmem>>, vector<16x256xbf16>,
    %c0_112 = arith.constant 0 : index
    %c18_113 = arith.constant 18 : index
    %157 = vector.load %arg19[%c0_112, %c18_113] : memref<16x290xbf16, #tpu.memory_space<vmem>>, vector<16x256xbf16>
    %cst_114 = arith.constant 0.000000e+00 : bf16
    %158 = vector.broadcast %cst_114 : bf16 to vector<16x256xbf16>
    %159 = vector.shape_cast %20 : vector<1x256xi1> to vector<1x256xi1>
    %160 = vector.broadcast %159 : vector<1x256xi1> to vector<16x256xi1>
    %161 = arith.select %160, %157, %158 : vector<16x256xi1>, vector<16x256xbf16>
    %c80_115 = arith.constant 80 : index
    %c0_116 = arith.constant 0 : index
    %162 = vector.load %arg20[%c80_115, %c0_116] : memref<144x256xbf16, #tpu.memory_space<vmem>>, vector<16x256xbf16>
    tpu.vector_store %arg20[%c80_115, %c0_116], %161 {strides = array<i32>} : memref<144x256xbf16, #tpu.memory_space<vmem>>, vector<16x256xbf16>,
    %c0_117 = arith.constant 0 : index
    %c32_118 = arith.constant 32 : index
    %163 = vector.load %arg19[%c0_117, %c32_118] : memref<16x290xbf16, #tpu.memory_space<vmem>>, vector<16x256xbf16>
    %cst_119 = arith.constant 0.000000e+00 : bf16
    %164 = vector.broadcast %cst_119 : bf16 to vector<16x256xbf16>
    %165 = vector.shape_cast %18 : vector<1x256xi1> to vector<1x256xi1>
    %166 = vector.broadcast %165 : vector<1x256xi1> to vector<16x256xi1>
    %167 = arith.select %166, %163, %164 : vector<16x256xi1>, vector<16x256xbf16>
    %c96_120 = arith.constant 96 : index
    %c0_121 = arith.constant 0 : index
    %168 = vector.load %arg20[%c96_120, %c0_121] : memref<144x256xbf16, #tpu.memory_space<vmem>>, vector<16x256xbf16>
    tpu.vector_store %arg20[%c96_120, %c0_121], %167 {strides = array<i32>} : memref<144x256xbf16, #tpu.memory_space<vmem>>, vector<16x256xbf16>,
    %c0_122 = arith.constant 0 : index
    %c33_123 = arith.constant 33 : index
    %169 = vector.load %arg19[%c0_122, %c33_123] : memref<16x290xbf16, #tpu.memory_space<vmem>>, vector<16x256xbf16>
    %c112_124 = arith.constant 112 : index
    %c0_125 = arith.constant 0 : index
    %170 = vector.load %arg20[%c112_124, %c0_125] : memref<144x256xbf16, #tpu.memory_space<vmem>>, vector<16x256xbf16>
    tpu.vector_store %arg20[%c112_124, %c0_125], %169 {strides = array<i32>} : memref<144x256xbf16, #tpu.memory_space<vmem>>, vector<16x256xbf16>,
    %c0_126 = arith.constant 0 : index
    %c34_127 = arith.constant 34 : index
    %171 = vector.load %arg19[%c0_126, %c34_127] : memref<16x290xbf16, #tpu.memory_space<vmem>>, vector<16x256xbf16>
    %cst_128 = arith.constant 0.000000e+00 : bf16
    %172 = vector.broadcast %cst_128 : bf16 to vector<16x256xbf16>
    %173 = vector.shape_cast %20 : vector<1x256xi1> to vector<1x256xi1>
    %174 = vector.broadcast %173 : vector<1x256xi1> to vector<16x256xi1>
    %175 = arith.select %174, %171, %172 : vector<16x256xi1>, vector<16x256xbf16>
    %c128_129 = arith.constant 128 : index
    %c0_130 = arith.constant 0 : index
    %176 = vector.load %arg20[%c128_129, %c0_130] : memref<144x256xbf16, #tpu.memory_space<vmem>>, vector<16x256xbf16>
    tpu.vector_store %arg20[%c128_129, %c0_130], %175 {strides = array<i32>} : memref<144x256xbf16, #tpu.memory_space<vmem>>, vector<16x256xbf16>,
    %c0_131 = arith.constant 0 : index
    %c0_132 = arith.constant 0 : index
    %177 = vector.load %arg16[%c0_131, %c0_132] : memref<8x144xf32, #tpu.memory_space<vmem>>, vector<8x144xf32>
    %178 = arith.truncf %177 : vector<8x144xf32> to vector<8x144xbf16>
    %c0_133 = arith.constant 0 : index
    %c0_134 = arith.constant 0 : index
    %179 = vector.load %arg20[%c0_133, %c0_134] : memref<144x256xbf16, #tpu.memory_space<vmem>>, vector<144x256xbf16>
    %cst_135 = arith.constant dense<0.000000e+00> : vector<8x256xf32>
    %180 = tpu.matmul %178, %179, %cst_135 {dimension_numbers = #tpu.dot_dimension_numbers<[1], [0], [0], [1], [0, 0, 1, 1], [], []>} : vector<8x144xbf16>, vector<144x256xbf16>, vector<8x256xf32> -> vector<8x256xf32>
    %c0_136 = arith.constant 0 : index
    %c0_137 = arith.constant 0 : index
    %181 = vector.load %arg17[%c0_136, %c0_137] : memref<8x1xf32, #tpu.memory_space<vmem>>, vector<8x1xf32>
    %182 = vector.broadcast %181 : vector<8x1xf32> to vector<8x256xf32>
    %183 = arith.addf %180, %182 : vector<8x256xf32>
    %c0_138 = arith.constant 0 : index
    %c12 = arith.constant 12 : index
    %c0_139 = arith.constant 0 : index
    %184 = vector.load %arg18[%c0_138, %c12, %c0_139] : memref<1x20x256xf32, #tpu.memory_space<vmem>>, vector<1x8x256xf32>
    %185 = vector.shape_cast %184 : vector<1x8x256xf32> to vector<8x256xf32>
    %186 = vector.shape_cast %183 : vector<8x256xf32> to vector<1x8x256xf32>
    tpu.vector_store %arg18[%c0_138, %c12, %c0_139], %186 {strides = array<i32>} : memref<1x20x256xf32, #tpu.memory_space<vmem>>, vector<1x8x256xf32>,
    return
  }
  func.func @transform_0(%arg0: i32) -> (i32, i32, i32) {
    %c0_i32 = arith.constant 0 : i32
    %c0_i32_0 = arith.constant 0 : i32
    %c0_i32_1 = arith.constant 0 : i32
    return %arg0, %c0_i32, %c0_i32_0 : i32, i32, i32
  }
  func.func @transform_1(%arg0: i32) -> (i32, i32) {
    %c0_i32 = arith.constant 0 : i32
    %c0_i32_0 = arith.constant 0 : i32
    %c0_i32_1 = arith.constant 0 : i32
    return %c0_i32, %c0_i32_0 : i32, i32
  }
  func.func @transform_2(%arg0: i32) -> (i32, i32) {
    %c0_i32 = arith.constant 0 : i32
    %c0_i32_0 = arith.constant 0 : i32
    %c0_i32_1 = arith.constant 0 : i32
    return %c0_i32, %c0_i32_0 : i32, i32
  }
  func.func @transform_3(%arg0: i32) -> (i32, i32) {
    %c0_i32 = arith.constant 0 : i32
    %c0_i32_0 = arith.constant 0 : i32
    %c0_i32_1 = arith.constant 0 : i32
    return %c0_i32, %c0_i32_0 : i32, i32
  }
  func.func @transform_4(%arg0: i32) -> (i32, i32) {
    %c0_i32 = arith.constant 0 : i32
    %c0_i32_0 = arith.constant 0 : i32
    %c0_i32_1 = arith.constant 0 : i32
    return %c0_i32, %c0_i32_0 : i32, i32
  }
  func.func @transform_5(%arg0: i32) -> (i32, i32) {
    %c0_i32 = arith.constant 0 : i32
    %c0_i32_0 = arith.constant 0 : i32
    %c0_i32_1 = arith.constant 0 : i32
    return %c0_i32, %c0_i32_0 : i32, i32
  }
  func.func @transform_6(%arg0: i32) -> (i32, i32) {
    %c0_i32 = arith.constant 0 : i32
    %c0_i32_0 = arith.constant 0 : i32
    %c0_i32_1 = arith.constant 0 : i32
    return %c0_i32, %c0_i32_0 : i32, i32
  }
  func.func @transform_7(%arg0: i32) -> (i32, i32) {
    %c0_i32 = arith.constant 0 : i32
    %c0_i32_0 = arith.constant 0 : i32
    %c0_i32_1 = arith.constant 0 : i32
    return %c0_i32, %c0_i32_0 : i32, i32
  }
  func.func @transform_8(%arg0: i32) -> (i32, i32) {
    %c0_i32 = arith.constant 0 : i32
    %c0_i32_0 = arith.constant 0 : i32
    %c0_i32_1 = arith.constant 0 : i32
    return %c0_i32, %c0_i32_0 : i32, i32
  }
  func.func @transform_9(%arg0: i32) -> (i32, i32) {
    %c0_i32 = arith.constant 0 : i32
    %c0_i32_0 = arith.constant 0 : i32
    %c0_i32_1 = arith.constant 0 : i32
    return %c0_i32, %c0_i32_0 : i32, i32
  }
  func.func @transform_10(%arg0: i32) -> (i32, i32) {
    %c0_i32 = arith.constant 0 : i32
    %c0_i32_0 = arith.constant 0 : i32
    %c0_i32_1 = arith.constant 0 : i32
    return %c0_i32, %c0_i32_0 : i32, i32
  }
  func.func @transform_11(%arg0: i32) -> (i32, i32) {
    %c0_i32 = arith.constant 0 : i32
    %c0_i32_0 = arith.constant 0 : i32
    %c0_i32_1 = arith.constant 0 : i32
    return %c0_i32, %c0_i32_0 : i32, i32
  }
  func.func @transform_12(%arg0: i32) -> (i32, i32) {
    %c0_i32 = arith.constant 0 : i32
    %c0_i32_0 = arith.constant 0 : i32
    %c0_i32_1 = arith.constant 0 : i32
    return %c0_i32, %c0_i32_0 : i32, i32
  }
  func.func @transform_13(%arg0: i32) -> (i32, i32) {
    %c0_i32 = arith.constant 0 : i32
    %c0_i32_0 = arith.constant 0 : i32
    %c0_i32_1 = arith.constant 0 : i32
    return %c0_i32, %c0_i32_0 : i32, i32
  }
  func.func @transform_14(%arg0: i32) -> (i32, i32) {
    %c0_i32 = arith.constant 0 : i32
    %c0_i32_0 = arith.constant 0 : i32
    %c0_i32_1 = arith.constant 0 : i32
    return %c0_i32, %c0_i32_0 : i32, i32
  }
  func.func @transform_15(%arg0: i32) -> (i32, i32) {
    %c0_i32 = arith.constant 0 : i32
    %c0_i32_0 = arith.constant 0 : i32
    %c0_i32_1 = arith.constant 0 : i32
    return %c0_i32, %c0_i32_0 : i32, i32
  }
  func.func @transform_16(%arg0: i32) -> (i32, i32) {
    %c0_i32 = arith.constant 0 : i32
    %c0_i32_0 = arith.constant 0 : i32
    %c0_i32_1 = arith.constant 0 : i32
    return %c0_i32, %c0_i32_0 : i32, i32
  }
  func.func @transform_17(%arg0: i32) -> (i32, i32, i32) {
    %c0_i32 = arith.constant 0 : i32
    %c0_i32_0 = arith.constant 0 : i32
    %c0_i32_1 = arith.constant 0 : i32
    return %arg0, %c0_i32, %c0_i32_0 : i32, i32, i32
  }
}

</mosaic_0001>

<bundles_post_ra>
// kernel: tpu_custom_call.1
= control target key start
LH: loop header
LB: loop body
LE: loop exit
PB: predicated region body
PF: predicated region fallthrough
CT: control target
= control target key end

     0   :  { %s1691_s24 = smov 0   ;;  %s2097_s0 = inlined_call_operand.vmem [shape: f32[2,4,256], index: 0, kind: input, shape index: {}]   ;;  %s2098_s1 = inlined_call_operand.vmem [shape: f32[4,1], index: 1, kind: input, shape index: {}]   ;;  %s2099_s2 = inlined_call_operand.vmem [shape: f32[4,1], index: 2, kind: input, shape index: {}]   ;;  %s2100_s3 = inlined_call_operand.vmem [shape: f32[16,4], index: 3, kind: input, shape index: {}]   ;;  %s2101_s4 = inlined_call_operand.vmem [shape: f32[16,1], index: 4, kind: input, shape index: {}]   ;;  %s2102_s5 = inlined_call_operand.vmem [shape: f32[16,1], index: 5, kind: input, shape index: {}]   ;;  %s2103_s6 = inlined_call_operand.vmem [shape: f32[16,1], index: 6, kind: input, shape index: {}]   ;;  %s2104_s7 = inlined_call_operand.vmem [shape: f32[8,144], index: 7, kind: input, shape index: {}]   ;;  %s2105_s8 = inlined_call_operand.vmem [shape: f32[8,1], index: 8, kind: input, shape index: {}]   ;;  %s2106_s9 = inlined_call_operand.vmem [shape: f32[12,1], index: 9, kind: input, shape index: {}]   ;;  %s2107_s10 = inlined_call_operand.vmem [shape: f32[12,1], index: 10, kind: input, shape index: {}]   ;;  %s2108_s11 = inlined_call_operand.vmem [shape: f32[16,12], index: 11, kind: input, shape index: {}]   ;;  %s2109_s12 = inlined_call_operand.vmem [shape: f32[16,1], index: 12, kind: input, shape index: {}]   ;;  %s2110_s13 = inlined_call_operand.vmem [shape: f32[16,1], index: 13, kind: input, shape index: {}]   ;;  %s2111_s14 = inlined_call_operand.vmem [shape: f32[16,1], index: 14, kind: input, shape index: {}]   ;;  %s2112_s15 = inlined_call_operand.vmem [shape: f32[8,144], index: 15, kind: input, shape index: {}]   ;;  %s2113_s16 = inlined_call_operand.vmem [shape: f32[8,1], index: 16, kind: input, shape index: {}]   ;;  %s2114_s17 = inlined_call_operand.vmem [shape: f32[2,20,256], index: 17, kind: output, shape index: {}]  }
   0x1   :  { %2141 = sst [smem:[#allocation4_spill]] %s2097_s0 }
   0x2   :  { %2142 = sst [smem:[#allocation5_spill]] %s2098_s1 }
   0x3 LB: > { %s1532_s25 = sadd.s32 4294967295, %s1584_s24   ;;  %p1536_p0 = scmp.ge.s32.totalorder %s1584_s24, 1  ;;  %s1584_s24 = sphi %s1691_s24, %s27_s24  }
   0x4   : > { %p487_p1 = scmp.lt.s32.totalorder %s1584_s24, 3 }
   0x6   : > { %p488_p2 = pnand %p1536_p0, %p487_p1 }
   0x7   : > { %s2143_s28 = sld [smem:[#allocation5_spill]] (!%p488_p2)  ;;  %v1586_v1 = vmov (!%p488_p2), 0   ;;  %p539_p3 = scmp.lt.s32.totalorder (!%p488_p2), %s1532_s25, 1  ;;  %v603_v2 = vld [vmem:[%s2099_s2] sm:$0xf] (!%p488_p2)  ;;  %v619_v8 = vld [vmem:[%s2101_s4 + $0x8] sm:$0xff] (!%p488_p2)  ;;  %v552_v28 = vlaneseq (!%p488_p2) }
   0x8   : > { %491 = sbr.rel (%p488_p2) target bundleno = 1633 (0x661), region = 88  ;;  %1575 = vset.pattern.permute.xlu0 (!%p488_p2), %v1586_v1  ;;  %673 = vmatprep.mubr.bf16.mxu1 (!%p488_p2), %v1586_v1  ;;  %s2144_s20 = sld [smem:[#allocation4_spill]] (!%p488_p2)  ;;  %v684_v3 = vld [vmem:[%s2102_s5] sm:$0xff] (!%p488_p2)  ;;  %v685_v9 = vld [vmem:[%s2102_s5 + $0x8] sm:$0xff] (!%p488_p2)  ;;  %vm634_vm0 = vcmask (!%p488_p2), 1041408   ;;  %vm630_vm1 = vcmask (!%p488_p2), 31744  }
   0x9   : > { %1576 = vset.pattern.permute.xlu1 (!%p488_p2), %v1586_v1  ;;  %1168 = vmatprep.mubr.bf16.mxu0 (!%p488_p2), %v1586_v1  ;;  %v700_v6 = vld [vmem:[%s2103_s6] sm:$0xff] (!%p488_p2)  ;;  %v701_v10 = vld [vmem:[%s2103_s6 + $0x8] sm:$0xff] (!%p488_p2)  ;;  %vm583_vm2 = vcmask (!%p488_p2), 138240   ;;  %v553_v29 = vand.u32 (!%p488_p2), 127, %v552_v28  ;;  %vm585_vm3 = vcmask (!%p488_p2), 277640   ;;  %v746_v51 = vshrl.u32 (!%p488_p2), %v552_v28, 7 }
   0xa   : > { %v618_v7 = vld [vmem:[%s2101_s4] sm:$0xff] (!%p488_p2)  ;;  %v614_v22 = vld [vmem:[%s2100_s3 + $0x8] sm:$0xff] (!%p488_p2)  ;;  %584 = vst.msk [vmem:[#allocation2] sm:$0xff] (!%p488_p2), %vm583_vm2, %v1586_v1  ;;  %s1587_s29 = smov (!%p488_p2), 17   ;;  %s1588_s0 = smov (!%p488_p2), 2   ;;  %vm733_vm10 = vcmask (!%p488_p2), 1047688  }
   0xb   : > { %622 = vperm.xlu1 (!%p488_p2), %1576, %v618_v7   ;;  %v613_v21 = vld [vmem:[%s2100_s3] sm:$0xff] (!%p488_p2)  ;;  %v554_v31 = vadd.s32 (!%p488_p2), 128, %v553_v29  ;;  %v559_v35 = vand.u32 (!%p488_p2), 15, %v553_v29  ;;  %586 = vst.msk [vmem:[#allocation2 + $0x10] sm:$0xff] (!%p488_p2), %vm585_vm3, %v1586_v1  ;;  %v747_v61 = vsub.s32 (!%p488_p2), 0, %v746_v51  ;;  %s1591_s19 = smov (!%p488_p2), 32  }
   0xc   : > { %v615_v26 = vpack.c.bf16 (!%p488_p2), %v614_v22, %v613_v21  ;;  %s1592_s1 = smov (!%p488_p2), 34   ;;  %s2129_s22 = smov (!%p488_p2), 126   ;;  %v1007_v47 = vld [vmem:[%s2105_s8] sm:$0xff] (!%p488_p2)  ;;  %v1196_v57 = vld [vmem:[%s2111_s14 + $0x8] sm:$0xff] (!%p488_p2) }
   0xd   : > { %v595_v0 = vld [vmem:[%s2143_s28] sm:$0xf] (!%p488_p2)  ;;  %v566_v36 = vand.u32 (!%p488_p2), 15, %v554_v31  ;;  %vm1748_vm4 = vcmp.lt.s32.totalorder (!%p488_p2), %v559_v35, 15  ;;  %vm1760_vm7 = vcmp.ge.s32.totalorder (!%p488_p2), %v559_v35, 1  ;;  %s2125_s23 = smov (!%p488_p2), 111  }
   0xe   : > { %598 = vperm.xlu0 (!%p488_p2), %1575, %v595_v0   ;;  %s2123_s26 = smov (!%p488_p2), 110   ;;  %s2121_s27 = smov (!%p488_p2), 96   ;;  %v1072_v48 = vld [vmem:[%s2106_s9] sm:$0xff] (!%p488_p2) }
   0xf   : > { %s2180_s25 = smov (!%p539_p3, %s1532_s25), 1  ;;  %627 = vperm.xlu1 %1576, %v619_v8   ;;  %vm1752_vm5 = vcmp.lt.s32.totalorder %v566_v36, 15  ;;  %vm1764_vm8 = vcmp.ge.s32.totalorder %v566_v36, 1 }
  0x10   : > { %s1548_s30 = sshll.u32 %s2180_s25, 3  ;;  %s1551_s18 = smul.u32 48, %s2180_s25  ;;  %vm785_vm6 = vmpackc.low %vm1752_vm5, %vm1748_vm4  ;;  %vm2134_vm4 = vcmask 130048  }
  0x11   : > { %s543_s21 = scalar_lea.vmem %s2144_s20, %s1548_s30  ;;  %v786_v0 = vsel %vm785_vm6, 65537, %v1586_v1  ;;  %vm743_vm9 = vmpackc.low %vm1764_vm8, %vm1760_vm7  ;;  %s1589_s30 = smov 16   ;;  %vm880_vm8 = vcmask 146432  }
  0x12   : > { %606 = vperm.xlu0 %1575, %v603_v2   ;;  %s1718_s28 = scalar_lea.vmem %s2114_s17, %s1551_s18  ;;  %v587_v4 = vld [vmem:[%s543_s21] sm:$0xff]  ;;  %v751_v2 = vsub.s32 4, %v746_v51  ;;  %v744_v7 = vsel %vm743_vm9, 65537, %v1586_v1  ;;  %s1590_s18 = smov 18   ;;  %vm911_vm9 = vcmask 261120  }
  0x13   : > { %v589_v5 = vcombine.high %v587_v4, %v587_v4  ;;  %591 = vst [vmem:[%s1718_s28] sm:$0xf] %v587_v4  ;;  %693 = vperm.xlu1 %1576, %v685_v9   ;;  %v1776_v8 = vrot.slane %v744_v7, %v747_v61  ;;  %s1593_s20 = smov 127   ;;  %s1594_s21 = smov 112   ;;  %v1089_v51 = vld [vmem:[%s2107_s10 + $0x8] sm:$0xf] }
  0x14   : > { %v1778_v9 = vrot.slane %v744_v7, %v751_v2  ;;  %s2164_s25 = smov 94  }
  0x15   : > { %592 = vst [vmem:[%s1718_s28 + $0x8] sm:$0xf] %v589_v5  ;;  %v790_v5 = vrot.slane %v786_v0, %v747_v61  ;;  %vm753_vm12 = vcmp.ne.s16.totalorder %v1776_v8, 0 }
  0x16   : > { %688 = vperm.xlu0 %1575, %v684_v3   ;;  %vm754_vm11 = vcmp.ne.s16.totalorder %v1778_v9, 0 }
  0x17   : > { %709 = vperm.xlu1 %1576, %v701_v10  }
  0x1a   : > { %704 = vperm.xlu0 %1575, %v700_v6   ;;  %v593_v12 = vld [vmem:[%s1718_s28] sm:$0xf]  ;;  %v794_v6 = vrot.slane %v786_v0, %v751_v2 }
  0x1c   : > { %v594_v13 = vld [vmem:[%s1718_s28 + $0x8] sm:$0xf] }
  0x8a   : > { %v623_v27 = vpop.permute.xlu1 %622 }
  0x8d   : > { %v599_v11 = vpop.permute.xlu0 %598 }
  0x8e   : > { %v601_v14 = vmul.f32 %v599_v11, %v593_v12  ;;  %v602_v15 = vmul.f32 %v599_v11, %v594_v13  ;;  %v628_v30 = vpop.permute.xlu1 %627 }
  0x91   : > { %v607_v16 = vpop.permute.xlu0 %606 }
  0x92   : > { %v609_v17 = vadd.f32 %v607_v16, %v601_v14  ;;  %v610_v18 = vadd.f32 %v607_v16, %v602_v15  ;;  %v694_v33 = vpop.permute.xlu1 %693 }
  0x94   : > { %v611_v19 = vmax.f32 %v609_v17, 0.0  ;;  %v612_v20 = vmax.f32 %v610_v18, 0.0 }
  0x95   : > { %v689_v32 = vpop.permute.xlu0 %688 }
  0x96   : > { %v617_v23 = vpack.c.bf16 %v612_v20, %v612_v20  ;;  %v616_v24 = vpack.c.bf16 %v611_v19, %v611_v19  ;;  %v710_v52 = vpop.permute.xlu1 %709 }
  0x98   : > { %1540 = vmatprep.subr.msk.bf16.mxu1 %vm634_vm0, %v617_v23  ;;  %v636_v25 = vsel %vm634_vm0, %v616_v24, 0  ;;  %vm799_vm0 = vcmask 15360  }
  0x99   : > { %642 = vmatpush1.bf16.msra.mxu1 %v636_v25  ;;  %v705_v44 = vpop.permute.xlu0 %704 }
  0x9c   : > { %1541 = vmatmul.mubr.msk.bf16.vlgmr.msra.gmra.mrb[0].mxu1 %vm630_vm1, %v615_v26 }
 0x16f   : > { %v675_v34 = vpop.f32.mrb[0].mxu1 }
 0x170   : > { %v676_v37 = vadd.f32 %v675_v34, %v623_v27  ;;  %v677_v38 = vpop.f32.mrb[1].mxu1 }
 0x171   : > { %v678_v39 = vadd.f32 %v677_v38, %v623_v27  ;;  %v679_v40 = vpop.f32.mrb[2].mxu1 }
 0x172   : > { %v696_v41 = vmul.f32 %v689_v32, %v676_v37  ;;  %v680_v42 = vadd.f32 %v679_v40, %v628_v30  ;;  %v681_v43 = vpop.f32.mrb[3].mxu1 }
 0x173   : > { %v697_v45 = vmul.f32 %v689_v32, %v678_v39  ;;  %v682_v46 = vadd.f32 %v681_v43, %v628_v30 }
 0x174   : > { %v712_v49 = vadd.f32 %v705_v44, %v696_v41  ;;  %v698_v50 = vmul.f32 %v694_v33, %v680_v42  ;;  %v986_v41 = vld [vmem:[%s2104_s7 + $0x8] sm:$0xff] }
 0x175   : > { %v713_v53 = vadd.f32 %v705_v44, %v697_v45  ;;  %v699_v54 = vmul.f32 %v694_v33, %v682_v46  ;;  %v988_v42 = vpack.c.bf16 %v986_v41, %v986_v41 }
 0x176   : > { %v714_v55 = vadd.f32 %v710_v52, %v698_v50  ;;  %v716_v59 = vmax.f32 %v712_v49, 0.0  ;;  %v1073_v49 = vld [vmem:[%s2106_s9 + $0x8] sm:$0xf]  ;;  %v1088_v50 = vld [vmem:[%s2107_s10] sm:$0xff] }
 0x177   : > { %v715_v56 = vadd.f32 %v710_v52, %v699_v54  ;;  %v717_v62 = vmax.f32 %v713_v53, 0.0  ;;  %1542 = vmatprep.mubr.msk.bf16.mxu1 %vm2134_vm4, %v988_v42  ;;  %v1113_v52 = vld [vmem:[%s2109_s12] sm:$0xff]  ;;  %v1114_v53 = vld [vmem:[%s2109_s12 + $0x8] sm:$0xff] }
 0x178   : > { %v718_v60 = vmax.f32 %v714_v55, 0.0  ;;  %v1179_v54 = vld [vmem:[%s2110_s13] sm:$0xff]  ;;  %v1180_v55 = vld [vmem:[%s2110_s13 + $0x8] sm:$0xff] }
 0x179   : > { %v719_v63 = vmax.f32 %v715_v56, 0.0  ;;  %v1195_v56 = vld [vmem:[%s2111_s14] sm:$0xff] }
 0x17a   : > { %v720_v3 = vpack.c.bf16 %v718_v60, %v716_v59 }
 0x17b   : > { %v721_v4 = vpack.c.bf16 %v719_v63, %v717_v62 }
 0x17c   : > { %724 = vrot.lane.b32.xlu0 %v720_v3, %s1587_s29 }
 0x17d   : > { %726 = vrot.lane.b32.xlu1 %v721_v4, %s1587_s29 }
 0x180   : > { %795 = vrot.lane.b32.xlu0 %v790_v5, %s1588_s0 }
 0x181   : > { %797 = vrot.lane.b32.xlu1 %v794_v6, %s1588_s0 }
 0x184   : > { %826 = vrot.lane.b32.xlu0 %v1776_v8, %s1589_s30 }
 0x185   : > { %828 = vrot.lane.b32.xlu1 %v1778_v9, %s1589_s30  ;;  %s2119_s30 = smov 95  }
 0x188   : > { %876 = vrot.lane.b32.xlu0 %v790_v5, %s1590_s18 }
 0x189   : > { %878 = vrot.lane.b32.xlu1 %v794_v6, %s1590_s18  ;;  %s2127_s18 = smov 94  }
 0x18c   : > { %907 = vrot.lane.b32.xlu0 %v1776_v8, %s1591_s19 }
 0x18d   : > { %909 = vrot.lane.b32.xlu1 %v1778_v9, %s1591_s19 }
 0x190   : > { %957 = vrot.lane.b32.xlu0 %v790_v5, %s1592_s1 }
 0x191   : > { %959 = vrot.lane.b32.xlu1 %v794_v6, %s1592_s1  ;;  %s2161_s1 = smov 95  }
 0x1ee   : > { %v725_v1 = vpop.permute.xlu0 %724 }
 0x1ef   : > { %734 = vst.msk [vmem:[#allocation2] sm:$0xff] %vm733_vm10, %v725_v1  ;;  %v727_v10 = vpop.permute.xlu1 %726 }
 0x1f0   : > { %v1787_v11 = vsel %vm583_vm2, %v725_v1, %v727_v10  ;;  %736 = vst.msk [vmem:[#allocation2 + $0x10] sm:$0xff] %vm583_vm2, %v727_v10 }
 0x1f1   : > { %1549 = vmatprep.subr.msk.bf16.mxu1 %vm754_vm11, %v1787_v11 }
 0x1f2   : > { %v1793_v12 = vpop.permute.xlu0 %795 }
 0x1f3   : > { %v1795_v13 = vpop.permute.xlu1 %797  ;;  %vm801_vm14 = vcmp.ne.s16.totalorder %v1793_v12, 0 }
 0x1f4   : > { %v1832_v22 = vsel %vm799_vm0, %v1793_v12, %v1795_v13  ;;  %vm803_vm1 = vcmp.ne.s16.totalorder %v1795_v13, 0 }
 0x1f5   : > { %vm802_vm3 = vcmp.ne.s16.totalorder %v1832_v22, 0 }
 0x1f6   : > { %v1798_v14 = vpop.permute.xlu0 %826  ;;  %v1800_v15 = vld [vmem:[#allocation2] sm:$0xff]  ;;  %v805_v26 = vsel %vm802_vm3, %v1787_v11, 0 }
 0x1f7   : > { %vm832_vm13 = vcmp.ne.s16.totalorder %v1798_v14, 0  ;;  %765 = vrot.lane.b32.xlu0 %v1800_v15, %s1593_s20  ;;  %v1805_v16 = vld [vmem:[#allocation2 + $0x10] sm:$0xff]  ;;  %v755_v17 = vsel %vm753_vm12, %v1800_v15, 0  ;;  %v1813_v18 = vpop.permute.xlu1 %828  ;;  %v804_v20 = vsel %vm801_vm14, %v1800_v15, 0 }
 0x1f8   : > { %769 = vrot.lane.b32.xlu1 %v1805_v16, %s1593_s20  ;;  %1018 = vmatpush1.bf16.msra.mxu1 %v755_v17  ;;  %v835_v19 = vsel %vm832_vm13, %v1800_v15, 0  ;;  %vm834_vm15 = vcmp.ne.s16.totalorder %v1813_v18, 0  ;;  %v806_v25 = vsel %vm803_vm1, %v1805_v16, 0  ;;  %v1855_v27 = vsel %vm2134_vm4, %v1798_v14, %v1813_v18 }
 0x1f9   : > { %v837_v21 = vsel %vm834_vm15, %v1805_v16, 0  ;;  %vm2116_vm6 = vcmp.ne.s16.totalorder %v1855_v27, 0  ;;  %vm2138_vm4 = vcmask 908288  }
 0x1fa   : > { %v1838_v23 = vpop.permute.xlu0 %876  ;;  %v836_v31 = vsel %vm2116_vm6, %v1787_v11, 0 }
 0x1fb   : > { %841 = vrot.lane.b32.xlu0 %v835_v19, %s1594_s21  ;;  %v1842_v24 = vpop.permute.xlu1 %878  ;;  %vm2115_vm5 = vcmp.ne.s16.totalorder %v1838_v23, 0 }
 0x1fc   : > { %810 = vrot.lane.b32.xlu1 %v804_v20, %s2129_s22  ;;  %v885_v28 = vsel %vm2115_vm5, %v1800_v15, 0  ;;  %vm884_vm7 = vcmp.ne.s16.totalorder %v1842_v24, 0  ;;  %v1880_v33 = vsel %vm880_vm8, %v1838_v23, %v1842_v24 }
 0x1fd   : > { %v887_v32 = vsel %vm884_vm7, %v1805_v16, 0  ;;  %vm2117_vm6 = vcmp.ne.s16.totalorder %v1880_v33, 0 }
 0x1fe   : > { %v1868_v30 = vpop.permute.xlu0 %907  ;;  %v886_v39 = vsel %vm2117_vm6, %v1787_v11, 0 }
 0x1ff   : > { %864 = vrot.lane.b32.xlu0 %v1805_v16, %s2125_s23  ;;  %v1864_v29 = vpop.permute.xlu1 %909  ;;  %vm913_vm5 = vcmp.ne.s16.totalorder %v1868_v30, 0 }
 0x200   : > { %845 = vrot.lane.b32.xlu1 %v837_v21, %s1594_s21  ;;  %vm915_vm0 = vcmp.ne.s16.totalorder %v1864_v29, 0  ;;  %v1886_v34 = vsel %vm911_vm9, %v1868_v30, %v1864_v29  ;;  %v916_v36 = vsel %vm913_vm5, %v1800_v15, 0  ;;  %vm961_vm9 = vcmask 277504   ;;  %v1396_v29 = vld [vmem:[%s2112_s15 + $0x8] sm:$0xff] }
 0x201   : > { %v918_v35 = vsel %vm915_vm0, %v1805_v16, 0  ;;  %vm2118_vm8 = vcmp.ne.s16.totalorder %v1886_v34, 0 }
 0x202   : > { %v1898_v37 = vpop.permute.xlu0 %957  ;;  %v917_v40 = vsel %vm2118_vm8, %v1787_v11, 0 }
 0x203   : > { %767 = vrot.lane.b32.xlu0 %v1787_v11, %s1593_s20  ;;  %v1900_v38 = vpop.permute.xlu1 %959 }
 0x204   : > { %862 = vrot.lane.b32.xlu1 %v1787_v11, %s2125_s23  ;;  %v1915_v43 = vsel %vm961_vm9, %v1898_v37, %v1900_v38  ;;  %vm2132_vm8 = vcmp.ne.s16.totalorder %v1900_v38, 0  ;;  %vm2131_vm9 = vcmp.ne.s16.totalorder %v1898_v37, 0 }
 0x205   : > { %vm2133_vm6 = vcmp.ne.s16.totalorder %v1915_v43, 0  ;;  %v968_v45 = vsel %vm2132_vm8, %v1805_v16, 0  ;;  %v966_v46 = vsel %vm2131_vm9, %v1800_v15, 0  ;;  %vm2136_vm9 = vcmask 1039360  }
 0x206   : > { %v967_v44 = vsel %vm2133_vm6, %v1787_v11, 0  ;;  %vm2135_vm8 = vcmask 1031168   ;;  %vm2137_vm6 = vcmask 916480  }
 0x207   : > { %814 = vrot.lane.b32.xlu0 %v806_v25, %s2129_s22 }
 0x208   : > { %812 = vrot.lane.b32.xlu1 %v805_v26, %s2129_s22  ;;  %s2154_s22 = smov 111  }
 0x20b   : > { %891 = vrot.lane.b32.xlu0 %v885_v28, %s2123_s26 }
 0x20c   : > { %860 = vrot.lane.b32.xlu1 %v1800_v15, %s2125_s23 }
 0x20f   : > { %843 = vrot.lane.b32.xlu0 %v836_v31, %s1594_s21 }
 0x210   : > { %895 = vrot.lane.b32.xlu1 %v887_v32, %s2123_s26 }
 0x213   : > { %926 = vrot.lane.b32.xlu0 %v918_v35, %s2121_s27 }
 0x214   : > { %922 = vrot.lane.b32.xlu1 %v916_v36, %s2121_s27 }
 0x217   : > { %893 = vrot.lane.b32.xlu0 %v886_v39, %s2123_s26 }
 0x218   : > { %924 = vrot.lane.b32.xlu1 %v917_v40, %s2121_s27 }
 0x21b   : > { %943 = vrot.lane.b32.xlu0 %v1787_v11, %s2119_s30 }
 0x21c   : > { %945 = vrot.lane.b32.xlu1 %v1805_v16, %s2119_s30 }
 0x21f   : > { %941 = vrot.lane.b32.xlu0 %v1800_v15, %s2119_s30 }
 0x220   : > { %974 = vrot.lane.b32.xlu1 %v967_v44, %s2127_s18 }
 0x223   : > { %976 = vrot.lane.b32.xlu0 %v968_v45, %s2127_s18 }
 0x224   : > { %972 = vrot.lane.b32.xlu1 %v966_v46, %s2127_s18  ;;  %s2156_s18 = smov 110  }
 0x227   : > { %1010 = vperm.xlu0 %1575, %v1007_v47   ;;  %v985_v47 = vld [vmem:[%s2104_s7] sm:$0xff] }
 0x228   : > { %1076 = vperm.xlu1 %1576, %v1072_v48  }
 0x22b   : > { %1081 = vperm.xlu0 %1575, %v1073_v49  }
 0x22c   : > { %1092 = vperm.xlu1 %1576, %v1088_v50  }
 0x22f   : > { %1097 = vperm.xlu0 %1575, %v1089_v51  }
 0x230   : > { %1117 = vperm.xlu1 %1576, %v1113_v52   ;;  %v987_v52 = vpack.c.bf16 %v985_v47, %v985_v47 }
 0x233   : > { %1122 = vperm.xlu0 %1575, %v1114_v53  }
 0x234   : > { %1183 = vperm.xlu1 %1576, %v1179_v54  }
 0x237   : > { %1188 = vperm.xlu0 %1575, %v1180_v55  }
 0x238   : > { %1199 = vperm.xlu1 %1576, %v1195_v56  }
 0x23b   : > { %1204 = vperm.xlu0 %1575, %v1196_v57  }
 0x269   : > { %v766_v58 = vpop.permute.xlu0 %765 }
 0x26a   : > { %v770_v59 = vpop.permute.xlu1 %769 }
 0x26d   : > { %v842_v60 = vpop.permute.xlu0 %841 }
 0x26e   : > { %v811_v61 = vpop.permute.xlu1 %810 }
 0x271   : > { %v865_v62 = vpop.permute.xlu0 %864 }
 0x272   : > { %v846_v63 = vpop.permute.xlu1 %845 }
 0x275   : > { %v768_v0 = vpop.permute.xlu0 %767 }
 0x276   : > { %v772_v2 = vsel %vm2136_vm9, %v766_v58, %v768_v0  ;;  %v863_v3 = vpop.permute.xlu1 %862  ;;  %v773_v4 = vsel %vm2136_vm9, %v768_v0, %v770_v59  ;;  %vm928_vm9 = vcmask 785408  }
 0x277   : > { %1019 = vmatprep.subr.bf16.mxu1 %v773_v4  ;;  %v868_v20 = vsel %vm2138_vm4, %v863_v3, %v865_v62 }
 0x278   : > { %1020 = vmatpush1.bf16.msra.mxu1 %v772_v2 }
 0x279   : > { %v815_v5 = vpop.permute.xlu0 %814 }
 0x27a   : > { %v813_v6 = vpop.permute.xlu1 %812 }
 0x27b   : > { %v817_v7 = vsel %vm2135_vm8, %v811_v61, %v813_v6  ;;  %v818_v1 = vsel %vm2135_vm8, %v813_v6, %v815_v5  ;;  %vm897_vm8 = vcmask 900096  }
 0x27c   : > { %1021 = vmatprep.subr.bf16.mxu1 %v818_v1 }
 0x27d   : > { %1022 = vmatpush1.bf16.msra.mxu1 %v817_v7  ;;  %v892_v10 = vpop.permute.xlu0 %891 }
 0x27e   : > { %v861_v11 = vpop.permute.xlu1 %860 }
 0x27f   : > { %v867_v26 = vsel %vm2138_vm4, %v861_v11, %v863_v3  ;;  %vm2139_vm4 = vcmask 769024  }
 0x281   : > { %v844_v15 = vpop.permute.xlu0 %843 }
 0x282   : > { %v848_v16 = vsel %vm2137_vm6, %v842_v60, %v844_v15  ;;  %v896_v17 = vpop.permute.xlu1 %895  ;;  %v849_v19 = vsel %vm2137_vm6, %v844_v15, %v846_v63  ;;  %vm2140_vm6 = vcmask 777216  }
 0x283   : > { %1023 = vmatprep.subr.bf16.mxu1 %v849_v19 }
 0x284   : > { %1024 = vmatpush1.bf16.msra.mxu1 %v848_v16 }
 0x285   : > { %1025 = vmatprep.subr.bf16.mxu1 %v868_v20  ;;  %v927_v21 = vpop.permute.xlu0 %926 }
 0x286   : > { %v923_v25 = vpop.permute.xlu1 %922 }
 0x288   : > { %1026 = vmatpush1.bf16.msra.mxu1 %v867_v26 }
 0x289   : > { %v894_v28 = vpop.permute.xlu0 %893 }
 0x28a   : > { %v898_v31 = vsel %vm897_vm8, %v892_v10, %v894_v28  ;;  %v925_v32 = vpop.permute.xlu1 %924  ;;  %v899_v35 = vsel %vm897_vm8, %v894_v28, %v896_v17 }
 0x28b   : > { %1027 = vmatprep.subr.bf16.mxu1 %v899_v35  ;;  %v930_v36 = vsel %vm928_vm9, %v925_v32, %v927_v21  ;;  %v929_v41 = vsel %vm928_vm9, %v923_v25, %v925_v32  ;;  %v1109_v32 = vld [vmem:[%s2108_s11 + $0x8] sm:$0xff] }
 0x28c   : > { %1028 = vmatpush1.bf16.msra.mxu1 %v898_v31  ;;  %v1108_v31 = vld [vmem:[%s2108_s11] sm:$0xff] }
 0x28d   : > { %1029 = vmatprep.subr.bf16.mxu1 %v930_v36  ;;  %v944_v39 = vpop.permute.xlu0 %943 }
 0x28e   : > { %v946_v40 = vpop.permute.xlu1 %945 }
 0x28f   : > { %v949_v42 = vsel %vm2140_vm6, %v944_v39, %v946_v40 }
 0x290   : > { %1030 = vmatpush1.bf16.msra.mxu1 %v929_v41 }
 0x291   : > { %1031 = vmatprep.subr.bf16.mxu1 %v949_v42  ;;  %v942_v44 = vpop.permute.xlu0 %941 }
 0x292   : > { %v948_v45 = vsel %vm2140_vm6, %v942_v44, %v944_v39  ;;  %v975_v46 = vpop.permute.xlu1 %974  ;;  %v1110_v39 = vpack.c.bf16 %v1109_v32, %v1108_v31  ;;  %vm1125_vm6 = vcmask 97280  }
 0x294   : > { %1032 = vmatpush1.bf16.msra.mxu1 %v948_v45 }
 0x295   : > { %v977_v48 = vpop.permute.xlu0 %976 }
 0x296   : > { %v973_v49 = vpop.permute.xlu1 %972  ;;  %v980_v50 = vsel %vm2139_vm4, %v975_v46, %v977_v48 }
 0x297   : > { %v979_v51 = vsel %vm2139_vm4, %v973_v49, %v975_v46  ;;  %1033 = vmatprep.subr.bf16.mxu1 %v980_v50  ;;  %vm1129_vm4 = vcmask 1045504  }
 0x298   : > { %1034 = vmatpush1.bf16.msra.mxu1 %v979_v51 }
 0x29b   : > { %1050 = vmatmul.mubr.bf16.vlgmr.msra.gmra.mrb[4].mxu1 %v987_v52 }
 0x2a6   : > { %v1011_v53 = vpop.permute.xlu0 %1010 }
 0x2a7   : > { %v1077_v62 = vpop.permute.xlu1 %1076 }
 0x2aa   : > { %v1082_v63 = vpop.permute.xlu0 %1081 }
 0x2ab   : > { %v1093_v7 = vpop.permute.xlu1 %1092 }
 0x2ae   : > { %v1098_v1 = vpop.permute.xlu0 %1097 }
 0x2af   : > { %v1118_v40 = vpop.permute.xlu1 %1117 }
 0x2b2   : > { %v1123_v41 = vpop.permute.xlu0 %1122 }
 0x2b3   : > { %v1184_v42 = vpop.permute.xlu1 %1183 }
 0x2b6   : > { %v1189_v44 = vpop.permute.xlu0 %1188 }
 0x36e   : > { %v1051_v54 = vpop.f32.mrb[4].mxu1 }
 0x36f   : > { %v1052_v55 = vadd.f32 %v1051_v54, %v1011_v53  ;;  %v1053_v56 = vpop.f32.mrb[5].mxu1 }
 0x370   : > { %v1054_v57 = vadd.f32 %v1053_v56, %v1011_v53  ;;  %v1055_v58 = vpop.f32.mrb[6].mxu1  ;;  %v1200_v53 = vpop.permute.xlu1 %1199 }
 0x371   : > { %v1060_v59 = vrot.slane %v1052_v55, 4  ;;  %v1056_v60 = vpop.f32.mrb[7].mxu1  ;;  %v1205_v58 = vpop.permute.xlu0 %1204 }
 0x372   : > { %v1061_v61 = vrot.slane %v1054_v57, 4 }
 0x373   : > { %1064 = vst [vmem:[%s1718_s28 + $0x10] ss:$-12 sps:$4 sm:$0xff] %v1060_v59  }
 0x374   : > { %1065 = vst [vmem:[%s1718_s28 + $0x18] ss:$-12 sps:$4 sm:$0xff] %v1061_v61  }
 0x37a   : > { %v1068_v0 = vld [vmem:[%s1718_s28] sm:$0xff]  ;;  %v1070_v2 = vld [vmem:[%s1718_s28 + $0x10] sm:$0xf] }
 0x37b   : > { %v1069_v3 = vld [vmem:[%s1718_s28 + $0x8] sm:$0xff]  ;;  %v1071_v4 = vld [vmem:[%s1718_s28 + $0x18] sm:$0xf]  ;;  %v1084_v5 = vmul.f32 %v1077_v62, %v1068_v0  ;;  %v1086_v6 = vmul.f32 %v1082_v63, %v1070_v2 }
 0x37c   : > { %v1085_v10 = vmul.f32 %v1077_v62, %v1069_v3  ;;  %v1087_v11 = vmul.f32 %v1082_v63, %v1071_v4 }
 0x37d   : > { %v1100_v15 = vadd.f32 %v1093_v7, %v1084_v5  ;;  %v1102_v16 = vadd.f32 %v1098_v1, %v1086_v6 }
 0x37e   : > { %v1101_v17 = vadd.f32 %v1093_v7, %v1085_v10  ;;  %v1103_v19 = vadd.f32 %v1098_v1, %v1087_v11 }
 0x37f   : > { %v1104_v20 = vmax.f32 %v1100_v15, 0.0  ;;  %v1106_v21 = vmax.f32 %v1102_v16, 0.0 }
 0x380   : > { %v1105_v25 = vmax.f32 %v1101_v17, 0.0  ;;  %v1107_v26 = vmax.f32 %v1103_v19, 0.0  ;;  %v1398_v19 = vpack.c.bf16 %v1396_v29, %v1396_v29 }
 0x381   : > { %v1111_v28 = vpack.c.bf16 %v1106_v21, %v1104_v20  ;;  %v1417_v20 = vld [vmem:[%s2113_s16] sm:$0xff] }
 0x382   : > { %v1112_v35 = vpack.c.bf16 %v1107_v26, %v1105_v25 }
 0x383   : > { %v1131_v36 = vsel %vm1129_vm4, %v1111_v28, 0 }
 0x384   : > { %1543 = vmatprep.subr.msk.bf16.mxu0 %vm1129_vm4, %v1112_v35 }
 0x385   : > { %1137 = vmatpush1.bf16.msra.mxu0 %v1131_v36 }
 0x388   : > { %1544 = vmatmul.mubr.msk.bf16.vlgmr.msra.gmra.mrb[0].mxu0 %vm1125_vm6, %v1110_v39 }
 0x45b   : > { %v1170_v45 = vpop.f32.mrb[0].mxu0 }
 0x45c   : > { %v1171_v46 = vadd.f32 %v1170_v45, %v1118_v40  ;;  %v1172_v47 = vpop.f32.mrb[1].mxu0 }
 0x45d   : > { %v1173_v48 = vadd.f32 %v1172_v47, %v1118_v40  ;;  %v1174_v49 = vpop.f32.mrb[2].mxu0 }
 0x45e   : > { %v1191_v50 = vmul.f32 %v1184_v42, %v1171_v46  ;;  %v1175_v51 = vadd.f32 %v1174_v49, %v1123_v41  ;;  %v1176_v52 = vpop.f32.mrb[3].mxu0 }
 0x45f   : > { %v1192_v54 = vmul.f32 %v1184_v42, %v1173_v48  ;;  %v1177_v55 = vadd.f32 %v1176_v52, %v1123_v41 }
 0x460   : > { %v1207_v56 = vadd.f32 %v1200_v53, %v1191_v50  ;;  %v1193_v57 = vmul.f32 %v1189_v44, %v1175_v51 }
 0x461   : > { %v1208_v59 = vadd.f32 %v1200_v53, %v1192_v54  ;;  %v1194_v60 = vmul.f32 %v1189_v44, %v1177_v55 }
 0x462   : > { %v1209_v61 = vadd.f32 %v1205_v58, %v1193_v57  ;;  %v1211_v63 = vmax.f32 %v1207_v56, 0.0 }
 0x463   : > { %v1210_v62 = vadd.f32 %v1205_v58, %v1194_v60  ;;  %v1212_v2 = vmax.f32 %v1208_v59, 0.0 }
 0x464   : > { %v1213_v0 = vmax.f32 %v1209_v61, 0.0 }
 0x465   : > { %v1214_v3 = vmax.f32 %v1210_v62, 0.0 }
 0x466   : > { %v1215_v4 = vpack.c.bf16 %v1213_v0, %v1211_v63 }
 0x467   : > { %v1216_v5 = vpack.c.bf16 %v1214_v3, %v1212_v2  ;;  %v1395_v2 = vld [vmem:[%s2112_s15] sm:$0xff] }
 0x468   : > { %1219 = vrot.lane.b32.xlu1 %v1215_v4, %s1587_s29 }
 0x469   : > { %1221 = vrot.lane.b32.xlu0 %v1216_v5, %s1587_s29  ;;  %s2153_s29 = smov 126  }
 0x4da   : > { %v1220_v6 = vpop.permute.xlu1 %1219 }
 0x4db   : > { %1227 = vst.msk [vmem:[#allocation2] sm:$0xff] %vm733_vm10, %v1220_v6  ;;  %v1222_v7 = vpop.permute.xlu0 %1221  ;;  %vm2157_vm10 = vcmp.ne.s16.totalorder %v1855_v27, 0 }
 0x4dc   : > { %v1223_v1 = vsel %vm583_vm2, %v1220_v6, %v1222_v7  ;;  %1229 = vst.msk [vmem:[#allocation2 + $0x10] sm:$0xff] %vm583_vm2, %v1222_v7  ;;  %vm2155_vm2 = vcmp.ne.s16.totalorder %v1838_v23, 0  ;;  %v1397_v7 = vpack.c.bf16 %v1395_v2, %v1395_v2 }
 0x4dd   : > { %1550 = vmatprep.subr.msk.bf16.mxu0 %vm754_vm11, %v1223_v1  ;;  %v1258_v12 = vsel %vm802_vm3, %v1223_v1, 0  ;;  %v1279_v18 = vsel %vm2157_vm10, %v1223_v1, 0  ;;  %vm2159_vm11 = vcmp.ne.s16.totalorder %v1880_v33, 0  ;;  %vm2167_vm3 = vcmask 1039360  }
 0x4de   : > { %v1318_v27 = vsel %vm2159_vm11, %v1223_v1, 0  ;;  %vm2168_vm4 = vmmov %vm2167_vm3  ;;  %vm2175_vm11 = vcmask 777216  }
 0x4e2   : > { %v1236_v10 = vld [vmem:[#allocation2] sm:$0xff] }
 0x4e3   : > { %1242 = vrot.lane.b32.xlu1 %v1236_v10, %s1593_s20  ;;  %v1238_v11 = vld [vmem:[#allocation2 + $0x10] sm:$0xff]  ;;  %v1232_v15 = vsel %vm753_vm12, %v1236_v10, 0  ;;  %v1278_v16 = vsel %vm832_vm13, %v1236_v10, 0  ;;  %v1257_v17 = vsel %vm801_vm14, %v1236_v10, 0  ;;  %v1317_v14 = vsel %vm2155_vm2, %v1236_v10, 0 }
 0x4e4   : > { %1246 = vrot.lane.b32.xlu0 %v1238_v11, %s1593_s20  ;;  %1427 = vmatpush1.bf16.msra.mxu0 %v1232_v15  ;;  %v1280_v9 = vsel %vm834_vm15, %v1238_v11, 0  ;;  %v1259_v8 = vsel %vm803_vm1, %v1238_v11, 0  ;;  %v1319_v13 = vsel %vm884_vm7, %v1238_v11, 0  ;;  %v1340_v22 = vsel %vm915_vm0, %v1238_v11, 0 }
 0x4e5   : > { %v1338_v23 = vsel %vm913_vm5, %v1236_v10, 0  ;;  %vm2160_vm12 = vcmp.ne.s16.totalorder %v1886_v34, 0  ;;  %vm2162_vm13 = vcmask 130048   ;;  %vm2163_vm14 = vcmp.ne.s16.totalorder %v1915_v43, 0 }
 0x4e6   : > { %v1339_v24 = vsel %vm2160_vm12, %v1223_v1, 0  ;;  %1545 = vmatprep.mubr.msk.bf16.mxu0 %vm2162_vm13, %v1398_v19  ;;  %v1378_v30 = vsel %vm2163_vm14, %v1223_v1, 0  ;;  %vm2165_vm15 = vcmp.ne.s16.totalorder %v1900_v38, 0  ;;  %vm2166_vm1 = vcmp.ne.s16.totalorder %v1898_v37, 0  ;;  %vm2176_vm12 = vmmov %vm2175_vm11 }
 0x4e7   : > { %1284 = vrot.lane.b32.xlu1 %v1278_v16, %s1594_s21  ;;  %v1379_v33 = vsel %vm2165_vm15, %v1238_v11, 0  ;;  %v1377_v34 = vsel %vm2166_vm1, %v1236_v10, 0  ;;  %vm2169_vm5 = vcmask 1031168   ;;  %vm2171_vm7 = vcmask 916480  }
 0x4e8   : > { %1263 = vrot.lane.b32.xlu0 %v1257_v17, %s2153_s29  ;;  %vm2170_vm6 = vmmov %vm2169_vm5  ;;  %vm2173_vm2 = vcmask 908288  }
 0x4e9   : > { %vm2172_vm0 = vmmov %vm2171_vm7 }
 0x4ea   : > { %vm2174_vm10 = vmmov %vm2173_vm2 }
 0x4eb   : > { %1306 = vrot.lane.b32.xlu1 %v1238_v11, %s2154_s22 }
 0x4ec   : > { %1288 = vrot.lane.b32.xlu0 %v1280_v9, %s1594_s21 }
 0x4ef   : > { %1244 = vrot.lane.b32.xlu1 %v1223_v1, %s1593_s20  ;;  %s2158_s20 = smov 96  }
 0x4f0   : > { %1304 = vrot.lane.b32.xlu0 %v1223_v1, %s2154_s22 }
 0x4f3   : > { %1267 = vrot.lane.b32.xlu1 %v1259_v8, %s2153_s29 }
 0x4f4   : > { %1265 = vrot.lane.b32.xlu0 %v1258_v12, %s2153_s29 }
 0x4f7   : > { %1323 = vrot.lane.b32.xlu1 %v1317_v14, %s2156_s18 }
 0x4f8   : > { %1302 = vrot.lane.b32.xlu0 %v1236_v10, %s2154_s22 }
 0x4fb   : > { %1286 = vrot.lane.b32.xlu1 %v1279_v18, %s1594_s21 }
 0x4fc   : > { %1327 = vrot.lane.b32.xlu0 %v1319_v13, %s2156_s18 }
 0x4ff   : > { %1348 = vrot.lane.b32.xlu1 %v1340_v22, %s2158_s20 }
 0x500   : > { %1344 = vrot.lane.b32.xlu0 %v1338_v23, %s2158_s20 }
 0x503   : > { %1325 = vrot.lane.b32.xlu1 %v1318_v27, %s2156_s18 }
 0x504   : > { %1346 = vrot.lane.b32.xlu0 %v1339_v24, %s2158_s20 }
 0x507   : > { %1364 = vrot.lane.b32.xlu1 %v1223_v1, %s2161_s1 }
 0x508   : > { %1366 = vrot.lane.b32.xlu0 %v1238_v11, %s2161_s1 }
 0x50b   : > { %1362 = vrot.lane.b32.xlu1 %v1236_v10, %s2161_s1 }
 0x50c   : > { %1385 = vrot.lane.b32.xlu0 %v1378_v30, %s2164_s25 }
 0x50f   : > { %1387 = vrot.lane.b32.xlu1 %v1379_v33, %s2164_s25 }
 0x510   : > { %1383 = vrot.lane.b32.xlu0 %v1377_v34, %s2164_s25 }
 0x513   : > { %1420 = vperm.xlu1 %1576, %v1417_v20  }
 0x555   : > { %v1243_v21 = vpop.permute.xlu1 %1242 }
 0x556   : > { %v1247_v43 = vpop.permute.xlu0 %1246 }
 0x559   : > { %v1285_v25 = vpop.permute.xlu1 %1284 }
 0x55a   : > { %v1264_v26 = vpop.permute.xlu0 %1263 }
 0x55d   : > { %v1307_v28 = vpop.permute.xlu1 %1306 }
 0x55e   : > { %v1289_v31 = vpop.permute.xlu0 %1288 }
 0x561   : > { %v1245_v38 = vpop.permute.xlu1 %1244 }
 0x562   : > { %v1248_v32 = vsel %vm2167_vm3, %v1243_v21, %v1245_v38  ;;  %v1305_v35 = vpop.permute.xlu0 %1304  ;;  %v1249_v37 = vsel %vm2168_vm4, %v1245_v38, %v1247_v43 }
 0x563   : > { %1428 = vmatprep.subr.bf16.mxu0 %v1249_v37  ;;  %v1309_v49 = vsel %vm2173_vm2, %v1305_v35, %v1307_v28 }
 0x564   : > { %1429 = vmatpush1.bf16.msra.mxu0 %v1248_v32 }
 0x565   : > { %v1268_v36 = vpop.permute.xlu1 %1267 }
 0x566   : > { %v1266_v39 = vpop.permute.xlu0 %1265 }
 0x567   : > { %v1269_v40 = vsel %vm2169_vm5, %v1264_v26, %v1266_v39  ;;  %v1270_v41 = vsel %vm2170_vm6, %v1266_v39, %v1268_v36 }
 0x568   : > { %1430 = vmatprep.subr.bf16.mxu0 %v1270_v41 }
 0x569   : > { %v1324_v42 = vpop.permute.xlu1 %1323  ;;  %1431 = vmatpush1.bf16.msra.mxu0 %v1269_v40 }
 0x56a   : > { %v1303_v44 = vpop.permute.xlu0 %1302 }
 0x56b   : > { %v1308_v52 = vsel %vm2174_vm10, %v1303_v44, %v1305_v35 }
 0x56d   : > { %v1287_v45 = vpop.permute.xlu1 %1286 }
 0x56e   : > { %v1290_v46 = vsel %vm2171_vm7, %v1285_v25, %v1287_v45  ;;  %v1328_v47 = vpop.permute.xlu0 %1327  ;;  %v1291_v48 = vsel %vm2172_vm0, %v1287_v45, %v1289_v31 }
 0x56f   : > { %1432 = vmatprep.subr.bf16.mxu0 %v1291_v48 }
 0x570   : > { %1433 = vmatpush1.bf16.msra.mxu0 %v1290_v46 }
 0x571   : > { %v1349_v50 = vpop.permute.xlu1 %1348  ;;  %1434 = vmatprep.subr.bf16.mxu0 %v1309_v49 }
 0x572   : > { %v1345_v51 = vpop.permute.xlu0 %1344 }
 0x574   : > { %1435 = vmatpush1.bf16.msra.mxu0 %v1308_v52 }
 0x575   : > { %v1326_v53 = vpop.permute.xlu1 %1325 }
 0x576   : > { %v1329_v54 = vsel %vm897_vm8, %v1324_v42, %v1326_v53  ;;  %v1347_v55 = vpop.permute.xlu0 %1346  ;;  %v1330_v56 = vsel %vm897_vm8, %v1326_v53, %v1328_v47  ;;  %vm2177_vm8 = vcmask 769024  }
 0x577   : > { %1436 = vmatprep.subr.bf16.mxu0 %v1330_v56  ;;  %v1351_v57 = vsel %vm928_vm9, %v1347_v55, %v1349_v50  ;;  %v1350_v60 = vsel %vm928_vm9, %v1345_v51, %v1347_v55  ;;  %vm2178_vm13 = vmmov %vm2177_vm8 }
 0x578   : > { %1437 = vmatpush1.bf16.msra.mxu0 %v1329_v54 }
 0x579   : > { %v1365_v58 = vpop.permute.xlu1 %1364  ;;  %1438 = vmatprep.subr.bf16.mxu0 %v1351_v57 }
 0x57a   : > { %v1367_v59 = vpop.permute.xlu0 %1366 }
 0x57b   : > { %v1369_v61 = vsel %vm2175_vm11, %v1365_v58, %v1367_v59 }
 0x57c   : > { %1439 = vmatpush1.bf16.msra.mxu0 %v1350_v60 }
 0x57d   : > { %v1363_v62 = vpop.permute.xlu1 %1362  ;;  %1440 = vmatprep.subr.bf16.mxu0 %v1369_v61 }
 0x57e   : > { %v1368_v63 = vsel %vm2176_vm12, %v1363_v62, %v1365_v58  ;;  %v1386_v0 = vpop.permute.xlu0 %1385 }
 0x580   : > { %1441 = vmatpush1.bf16.msra.mxu0 %v1368_v63 }
 0x581   : > { %v1388_v3 = vpop.permute.xlu1 %1387 }
 0x582   : > { %v1384_v4 = vpop.permute.xlu0 %1383  ;;  %v1390_v5 = vsel %vm2177_vm8, %v1386_v0, %v1388_v3 }
 0x583   : > { %v1389_v6 = vsel %vm2178_vm13, %v1384_v4, %v1386_v0  ;;  %1442 = vmatprep.subr.bf16.mxu0 %v1390_v5 }
 0x584   : > { %1443 = vmatpush1.bf16.msra.mxu0 %v1389_v6 }
 0x587   : > { %1459 = vmatmul.mubr.bf16.vlgmr.msra.gmra.mrb[4].mxu0 %v1397_v7 }
 0x592   : > { %v1421_v1 = vpop.permute.xlu1 %1420 }
 0x65a   : > { %v1460_v10 = vpop.f32.mrb[4].mxu0 }
 0x65b   : > { %v1461_v11 = vadd.f32 %v1460_v10, %v1421_v1  ;;  %v1462_v15 = vpop.f32.mrb[5].mxu0 }
 0x65c   : > { %v1463_v16 = vadd.f32 %v1462_v15, %v1421_v1  ;;  %v1464_v17 = vpop.f32.mrb[6].mxu0 }
 0x65d   : > { %v1469_v9 = vrot.slane %v1461_v11, 4  ;;  %v1465_v8 = vpop.f32.mrb[7].mxu0 }
 0x65e   : > { %v1470_v12 = vrot.slane %v1463_v16, 4 }
 0x65f   : > { %1473 = vst [vmem:[%s1718_s28 + $0x20] ss:$-12 sps:$4 sm:$0xff] %v1469_v9  }
 0x660   : > { %1474 = vst [vmem:[%s1718_s28 + $0x28] ss:$-12 sps:$4 sm:$0xff] %v1470_v12  }
 0x661 PF: > { %s27_s24 = sadd.s32 1, %s1584_s24  }
 0x662   : > { %p24_p4 = scmp.ge.s32.totalorder %s27_s24, 4  }
 0x664   :  { %26 = sbr.rel (!%p24_p4) target bundleno = 3 (0x3), region = 118 }

</bundles_post_ra>
